<compile_context>
chip_gen: v7x
topology: tpu7x:2x2x1
jax: 0.10.0
libtpu: 0.0.40
codegen_flags: <defaults>
</compile_context>

<pallas_src>
import math
import jax
import jax.numpy as jnp
from jax.experimental import pallas as pl
from jax.experimental.pallas import tpu as pltpu

# ----------------------------- config ---------------------------------------
VOCAB = 128      # synthetic vocab (real GPT-2: 50257)
N_POS = 32       # max positions
D = 32           # hidden size
N_HEAD = 2
DH = D // N_HEAD
FF = 4 * D
N_LAYER = 2
LN_EPS = 1e-5


# ----------------------------- helpers --------------------------------------
def _layer_norm(x, g, b):
    mu = jnp.mean(x, axis=-1, keepdims=True)
    var = jnp.mean((x - mu) ** 2, axis=-1, keepdims=True)
    return (x - mu) * jax.lax.rsqrt(var + LN_EPS) * g + b


def _gelu_new(x):
    # GPT-2 "gelu_new" (tanh approximation)
    return 0.5 * x * (1.0 + jnp.tanh(0.7978845608028654 * (x + 0.044715 * x * x * x)))


# ------------------ fully fused GPT-2 forward kernel ------------------------
def gpt2_fused_kernel(x_ref, bias_ref, labels_ref,
                      w_qkv_ref, b_qkv_ref, w_o_ref, vecs_ref,
                      w_fc_ref, b_fc_ref, w_pr_ref,
                      lnf_ref, wte_t_ref,
                      logits_ref, kv_ref, loss_ref):
    BT = x_ref.shape[0]
    V = wte_t_ref.shape[1]
    scale = 1.0 / math.sqrt(DH)
    bf16 = jnp.bfloat16

    bias = bias_ref[...]              # (BT, BT) causal+pad+batch-block-diag, f32
    h = x_ref[...]                    # (BT, D) activations, stay in vregs/VMEM

    for l in range(N_LAYER):          # static unroll — all weights resident
        vecs = vecs_ref[l]            # (6, D): ln1_g, ln1_b, ln2_g, ln2_b, b_o, b_pr
        ln1_g, ln1_b = vecs[0:1], vecs[1:2]
        ln2_g, ln2_b = vecs[2:3], vecs[3:4]
        b_o, b_pr = vecs[4:5], vecs[5:6]

        # ------------------------- attention --------------------------------
        xn = _layer_norm(h, ln1_g, ln1_b)
        qkv = jnp.dot(xn.astype(bf16), w_qkv_ref[l],
                      preferred_element_type=jnp.float32) + b_qkv_ref[l]   # (BT, 3D)
        q = qkv[:, :D]
        kv = qkv[:, D:]                 # k||v, lane-contiguous (BT, 2D)
        kv_ref[l] = kv                  # past_key_values slab; B/T/head split in wrapper
        k = kv[:, :D]
        v = kv[:, D:]

        w_o_l = w_o_ref[l]              # (D, D) bf16
        attn = b_o                      # (1, D); broadcasts to (BT, D) on first add
        for hh in range(N_HEAD):        # unrolled per-head 2-D dots (no stack/concat)
            lo = hh * DH
            qh = q[:, lo:lo + DH].astype(bf16)
            kh = k[:, lo:lo + DH].astype(bf16)
            vh = v[:, lo:lo + DH].astype(bf16)
            # q @ k^T without an explicit transpose (contract on last dims)
            s = jax.lax.dot_general(qh, kh, (((1,), (1,)), ((), ())),
                                    preferred_element_type=jnp.float32) * scale
            s = s + bias
            s = s - jnp.max(s, axis=-1, keepdims=True)
            p = jnp.exp(s)
            p = p * pl.reciprocal(jnp.sum(p, axis=-1, keepdims=True), approx=True)
            o_h = jnp.dot(p.astype(bf16), vh,
                          preferred_element_type=jnp.float32)              # (BT, DH)
            # fold the output projection per head: o_cat @ w_o == sum_h o_h @ w_o[rows_h]
            attn = attn + jnp.dot(o_h.astype(bf16), w_o_l[lo:lo + DH, :],
                                  preferred_element_type=jnp.float32)
        h1 = h + attn

        # --------------------------- MLP -------------------------------------
        h1n = _layer_norm(h1, ln2_g, ln2_b)
        f = jnp.dot(h1n.astype(bf16), w_fc_ref[l],
                    preferred_element_type=jnp.float32) + b_fc_ref[l]
        g = _gelu_new(f)
        m = jnp.dot(g.astype(bf16), w_pr_ref[l],
                    preferred_element_type=jnp.float32) + b_pr
        h = h1 + m

    # -------- final LN -> tied LM head -> shifted cross-entropy (fused) ------
    lnf = lnf_ref[...]                                             # (2, D)
    xn = _layer_norm(h, lnf[0:1], lnf[1:2])
    logits = jnp.dot(xn.astype(bf16), wte_t_ref[...],
                     preferred_element_type=jnp.float32)           # (BT, V) lane-dense
    logits_ref[...] = logits

    lmax = jnp.max(logits, axis=-1, keepdims=True)
    lse = lmax + jnp.log(jnp.sum(jnp.exp(logits - lmax), axis=-1, keepdims=True))
    labels = labels_ref[...]                                       # (BT, 1) int32 (already shifted)
    vocab_ids = jax.lax.broadcasted_iota(jnp.int32, (BT, V), 1)
    tgt = jnp.sum(jnp.where(vocab_ids == labels, logits, 0.0), axis=-1, keepdims=True)
    nll = lse - tgt                                                # (BT, 1)
    valid = (labels >= 0).astype(jnp.float32)                      # ignore_index = -100
    loss_ref[0, 0] = jnp.sum(nll * valid) / jnp.maximum(jnp.sum(valid), 1.0)


def run_gpt2(h_flat, bias, labels_flat, p):
    BT = h_flat.shape[0]

    def vmem():
        return pl.BlockSpec(memory_space=pltpu.MemorySpace.VMEM)

    out_shapes = (
        jax.ShapeDtypeStruct((BT, VOCAB), jnp.float32),          # logits (lane-dense V)
        jax.ShapeDtypeStruct((N_LAYER, BT, 2 * D), jnp.float32),  # k||v per layer
        jax.ShapeDtypeStruct((1, 1), jnp.float32),                # scalar loss (SMEM)
    )
    return pl.pallas_call(
        gpt2_fused_kernel,
        out_shape=out_shapes,
        in_specs=[vmem()] * 12,
        out_specs=(vmem(), vmem(),
                   pl.BlockSpec(memory_space=pltpu.MemorySpace.SMEM)),
        compiler_params=pltpu.CompilerParams(vmem_limit_bytes=32 * 1024 * 1024),
    )(h_flat, bias, labels_flat,
      p["w_qkv"], p["b_qkv"], p["w_o"], p["vecs"],
      p["w_fc"], p["b_fc"], p["w_pr"],
      p["ln_f"], p["wte_t"])


# ------------------------------ parameters ----------------------------------
def init_params(key):
    def nrm(k, shape, std=0.02, dtype=jnp.float32):
        return (std * jax.random.normal(k, shape)).astype(dtype)

    ks = jax.random.split(key, 8)
    L = N_LAYER
    wte = nrm(ks[0], (VOCAB, D))                       # f32 for the embedding gather

    # packed per-layer small vectors: rows = ln1_g, ln1_b, ln2_g, ln2_b, b_o, b_pr
    vecs = jnp.zeros((L, 6, D), jnp.float32)
    vecs = vecs.at[:, 0, :].set(1.0)                   # ln1_g
    vecs = vecs.at[:, 2, :].set(1.0)                   # ln2_g

    return {
        "wte": wte,
        "wte_t": wte.T.astype(jnp.bfloat16),           # pre-transposed tied LM head (D, V)
        "wpe": nrm(ks[1], (N_POS, D)),
        "ln_f": jnp.concatenate([jnp.ones((1, D), jnp.float32),
                                 jnp.zeros((1, D), jnp.float32)], axis=0),
        "vecs": vecs,
        "w_qkv": nrm(ks[2], (L, D, 3 * D), dtype=jnp.bfloat16),
        "b_qkv": jnp.zeros((L, 1, 3 * D), jnp.float32),
        "w_o": nrm(ks[3], (L, D, D), dtype=jnp.bfloat16),
        "w_fc": nrm(ks[4], (L, D, FF), dtype=jnp.bfloat16),
        "b_fc": jnp.zeros((L, 1, FF), jnp.float32),
        "w_pr": nrm(ks[5], (L, FF, D), dtype=jnp.bfloat16),
    }


# ------------------------------ forward (glue) ------------------------------
def clause_generator_forward(params, input_ids, attention_mask=None, labels=None):
    """Mirrors ClauseGenerator.forward -> {'loss', 'logits', 'past_key_values'}."""
    B, T = input_ids.shape
    if attention_mask is None:
        attention_mask = jnp.ones((B, T), jnp.float32)
    am = attention_mask.astype(jnp.float32)

    # embeddings (gather glue, outside the kernel), flattened to (B*T, D)
    h = params["wte"][input_ids] + params["wpe"][:T][None, :, :]
    h_flat = h.reshape(B * T, D).astype(jnp.float32)

    # causal + key-padding + batch-block-diagonal additive bias, built ONCE,
    # shared by every layer inside the kernel.
    t = jnp.arange(T)
    causal = jnp.where(t[None, :] <= t[:, None], 0.0, -1e9).astype(jnp.float32)   # (T, T)
    pad = (1.0 - am) * (-1e9)                                                     # (B, T)
    bias_bt = causal[None, :, :] + pad[:, None, :]                                # (B, T, T)
    eye = jnp.eye(B, dtype=jnp.float32)[:, None, :, None]                         # (B, 1, B, 1)
    bias = (eye * bias_bt[:, :, None, :] + (1.0 - eye) * (-1e9)).reshape(B * T, B * T)

    # GPT-2 shift: logits[:, :-1] vs labels[:, 1:]; pad last slot with -100.
    if labels is None:
        shifted = jnp.full((B, T), -100, jnp.int32)
    else:
        shifted = jnp.concatenate(
            [labels[:, 1:].astype(jnp.int32),
             jnp.full((B, 1), -100, jnp.int32)], axis=1)

    logits_flat, kv_all, loss = run_gpt2(h_flat, bias, shifted.reshape(B * T, 1), params)

    # past_key_values: kernel emits lane-contiguous k||v slabs; split outside Pallas.
    past_key_values = []
    for l in range(N_LAYER):
        k_l = kv_all[l, :, :D].reshape(B, T, N_HEAD, DH).transpose(0, 2, 1, 3)
        v_l = kv_all[l, :, D:].reshape(B, T, N_HEAD, DH).transpose(0, 2, 1, 3)
        past_key_values.append((k_l, v_l))

    logits = logits_flat.reshape(B, T, VOCAB)
    loss_out = loss[0, 0] if labels is not None else None
    return {"loss": loss_out, "logits": logits,
            "past_key_values": tuple(past_key_values)}


# ---------------------------------- main -------------------------------------
if __name__ == "__main__":
    key = jax.random.PRNGKey(0)
    pkey, ikey = jax.random.split(key)
    params = init_params(pkey)

    B, T = 2, 8
    input_ids = jax.random.randint(ikey, (B, T), 0, VOCAB, dtype=jnp.int32)
    attention_mask = jnp.ones((B, T), jnp.float32)
    labels = input_ids  # standard LM training target

    out = clause_generator_forward(params, input_ids, attention_mask, labels)
    jax.block_until_ready(out["logits"])
    jax.block_until_ready(out["loss"])
    for (k, v) in out["past_key_values"]:
        jax.block_until_ready(k)
        jax.block_until_ready(v)

    assert out["logits"].shape == (B, T, VOCAB)
    assert out["loss"].shape == ()
    assert len(out["past_key_values"]) == N_LAYER
    assert out["past_key_values"][0][0].shape == (B, N_HEAD, T, DH)
    assert bool(jnp.isfinite(out["loss"]))

    print("KERNEL_OK")
</pallas_src>

<mosaic_0001>
module attributes {stable_mosaic.version = 11 : i64} {
  func.func @gpt2_fused_kernel(%arg0: memref<16x32xf32, #tpu.memory_space<vmem>>, %arg1: memref<16x16xf32, #tpu.memory_space<vmem>>, %arg2: memref<16x1xi32, #tpu.memory_space<vmem>>, %arg3: memref<2x32x96xbf16, #tpu.memory_space<vmem>>, %arg4: memref<2x1x96xf32, #tpu.memory_space<vmem>>, %arg5: memref<2x32x32xbf16, #tpu.memory_space<vmem>>, %arg6: memref<2x6x32xf32, #tpu.memory_space<vmem>>, %arg7: memref<2x32x128xbf16, #tpu.memory_space<vmem>>, %arg8: memref<2x1x128xf32, #tpu.memory_space<vmem>>, %arg9: memref<2x128x32xbf16, #tpu.memory_space<vmem>>, %arg10: memref<2x32xf32, #tpu.memory_space<vmem>>, %arg11: memref<32x128xbf16, #tpu.memory_space<vmem>>, %arg12: memref<16x128xf32, #tpu.memory_space<vmem>>, %arg13: memref<2x16x64xf32, #tpu.memory_space<vmem>>, %arg14: memref<1x1xf32, #tpu.memory_space<smem>>) attributes {dimension_semantics = [], scalar_prefetch = 0 : i64, scratch_operands = 0 : i64, tpu.core_type = #tpu.core_type<tc>} {
    %c0 = arith.constant 0 : index
    %c0_0 = arith.constant 0 : index
    %0 = vector.load %arg1[%c0, %c0_0] : memref<16x16xf32, #tpu.memory_space<vmem>>, vector<16x16xf32>
    %c0_1 = arith.constant 0 : index
    %c0_2 = arith.constant 0 : index
    %1 = vector.load %arg0[%c0_1, %c0_2] : memref<16x32xf32, #tpu.memory_space<vmem>>, vector<16x32xf32>
    %c0_3 = arith.constant 0 : index
    %c0_4 = arith.constant 0 : index
    %c0_5 = arith.constant 0 : index
    %2 = vector.load %arg6[%c0_3, %c0_4, %c0_5] : memref<2x6x32xf32, #tpu.memory_space<vmem>>, vector<1x6x32xf32>
    %3 = vector.shape_cast %2 : vector<1x6x32xf32> to vector<6x32xf32>
    %4 = vector.extract_strided_slice %3 {offsets = [0, 0], sizes = [1, 32], strides = [1, 1]} : vector<6x32xf32> to vector<1x32xf32>
    %5 = vector.extract_strided_slice %3 {offsets = [1, 0], sizes = [1, 32], strides = [1, 1]} : vector<6x32xf32> to vector<1x32xf32>
    %6 = vector.extract_strided_slice %3 {offsets = [2, 0], sizes = [1, 32], strides = [1, 1]} : vector<6x32xf32> to vector<1x32xf32>
    %7 = vector.extract_strided_slice %3 {offsets = [3, 0], sizes = [1, 32], strides = [1, 1]} : vector<6x32xf32> to vector<1x32xf32>
    %8 = vector.extract_strided_slice %3 {offsets = [4, 0], sizes = [1, 32], strides = [1, 1]} : vector<6x32xf32> to vector<1x32xf32>
    %9 = vector.extract_strided_slice %3 {offsets = [5, 0], sizes = [1, 32], strides = [1, 1]} : vector<6x32xf32> to vector<1x32xf32>
    %cst = arith.constant dense<0.000000e+00> : vector<16xf32>
    %10 = vector.multi_reduction <add>, %1, %cst [1] : vector<16x32xf32> to vector<16xf32>
    %11 = vector.shape_cast %10 : vector<16xf32> to vector<16x1xf32>
    %cst_6 = arith.constant 3.200000e+01 : f32
    %12 = vector.broadcast %cst_6 : f32 to vector<16x1xf32>
    %13 = arith.divf %11, %12 : vector<16x1xf32>
    %14 = vector.broadcast %13 : vector<16x1xf32> to vector<16x32xf32>
    %15 = arith.subf %1, %14 : vector<16x32xf32>
    %16 = arith.mulf %15, %15 : vector<16x32xf32>
    %cst_7 = arith.constant dense<0.000000e+00> : vector<16xf32>
    %17 = vector.multi_reduction <add>, %16, %cst_7 [1] : vector<16x32xf32> to vector<16xf32>
    %18 = vector.shape_cast %17 : vector<16xf32> to vector<16x1xf32>
    %cst_8 = arith.constant 3.200000e+01 : f32
    %19 = vector.broadcast %cst_8 : f32 to vector<16x1xf32>
    %20 = arith.divf %18, %19 : vector<16x1xf32>
    %21 = vector.broadcast %13 : vector<16x1xf32> to vector<16x32xf32>
    %22 = arith.subf %1, %21 : vector<16x32xf32>
    %cst_9 = arith.constant 9.99999974E-6 : f32
    %23 = vector.broadcast %cst_9 : f32 to vector<16x1xf32>
    %24 = arith.addf %20, %23 : vector<16x1xf32>
    %25 = math.rsqrt %24 : vector<16x1xf32>
    %26 = vector.broadcast %25 : vector<16x1xf32> to vector<16x32xf32>
    %27 = arith.mulf %22, %26 : vector<16x32xf32>
    %28 = vector.broadcast %4 : vector<1x32xf32> to vector<16x32xf32>
    %29 = arith.mulf %27, %28 : vector<16x32xf32>
    %30 = vector.broadcast %5 : vector<1x32xf32> to vector<16x32xf32>
    %31 = arith.addf %29, %30 : vector<16x32xf32>
    %32 = arith.truncf %31 : vector<16x32xf32> to vector<16x32xbf16>
    %c0_10 = arith.constant 0 : index
    %c0_11 = arith.constant 0 : index
    %c0_12 = arith.constant 0 : index
    %33 = vector.load %arg3[%c0_10, %c0_11, %c0_12] : memref<2x32x96xbf16, #tpu.memory_space<vmem>>, vector<1x32x96xbf16>
    %34 = vector.shape_cast %33 : vector<1x32x96xbf16> to vector<32x96xbf16>
    %cst_13 = arith.constant dense<0.000000e+00> : vector<16x96xf32>
    %35 = tpu.matmul %32, %34, %cst_13 {dimension_numbers = #tpu.dot_dimension_numbers<[1], [0], [0], [1], [0, 0, 1, 1], [], []>} : vector<16x32xbf16>, vector<32x96xbf16>, vector<16x96xf32> -> vector<16x96xf32>
    %c0_14 = arith.constant 0 : index
    %c0_15 = arith.constant 0 : index
    %c0_16 = arith.constant 0 : index
    %36 = vector.load %arg4[%c0_14, %c0_15, %c0_16] : memref<2x1x96xf32, #tpu.memory_space<vmem>>, vector<1x1x96xf32>
    %37 = vector.shape_cast %36 : vector<1x1x96xf32> to vector<1x96xf32>
    %38 = vector.broadcast %37 : vector<1x96xf32> to vector<16x96xf32>
    %39 = arith.addf %35, %38 : vector<16x96xf32>
    %40 = vector.extract_strided_slice %39 {offsets = [0, 0], sizes = [16, 32], strides = [1, 1]} : vector<16x96xf32> to vector<16x32xf32>
    %41 = vector.extract_strided_slice %39 {offsets = [0, 32], sizes = [16, 64], strides = [1, 1]} : vector<16x96xf32> to vector<16x64xf32>
    %c0_17 = arith.constant 0 : index
    %c0_18 = arith.constant 0 : index
    %c0_19 = arith.constant 0 : index
    %42 = vector.load %arg13[%c0_17, %c0_18, %c0_19] : memref<2x16x64xf32, #tpu.memory_space<vmem>>, vector<1x16x64xf32>
    %43 = vector.shape_cast %42 : vector<1x16x64xf32> to vector<16x64xf32>
    %44 = vector.shape_cast %41 : vector<16x64xf32> to vector<1x16x64xf32>
    tpu.vector_store %arg13[%c0_17, %c0_18, %c0_19], %44 {strides = array<i32>} : memref<2x16x64xf32, #tpu.memory_space<vmem>>, vector<1x16x64xf32>,
    %45 = vector.extract_strided_slice %41 {offsets = [0, 0], sizes = [16, 32], strides = [1, 1]} : vector<16x64xf32> to vector<16x32xf32>
    %46 = vector.extract_strided_slice %41 {offsets = [0, 32], sizes = [16, 32], strides = [1, 1]} : vector<16x64xf32> to vector<16x32xf32>
    %c0_20 = arith.constant 0 : index
    %c0_21 = arith.constant 0 : index
    %c0_22 = arith.constant 0 : index
    %47 = vector.load %arg5[%c0_20, %c0_21, %c0_22] : memref<2x32x32xbf16, #tpu.memory_space<vmem>>, vector<1x32x32xbf16>
    %48 = vector.shape_cast %47 : vector<1x32x32xbf16> to vector<32x32xbf16>
    %49 = vector.extract_strided_slice %40 {offsets = [0, 0], sizes = [16, 16], strides = [1, 1]} : vector<16x32xf32> to vector<16x16xf32>
    %50 = arith.truncf %49 : vector<16x16xf32> to vector<16x16xbf16>
    %51 = vector.extract_strided_slice %45 {offsets = [0, 0], sizes = [16, 16], strides = [1, 1]} : vector<16x32xf32> to vector<16x16xf32>
    %52 = arith.truncf %51 : vector<16x16xf32> to vector<16x16xbf16>
    %53 = vector.extract_strided_slice %46 {offsets = [0, 0], sizes = [16, 16], strides = [1, 1]} : vector<16x32xf32> to vector<16x16xf32>
    %54 = arith.truncf %53 : vector<16x16xf32> to vector<16x16xbf16>
    %cst_23 = arith.constant dense<0.000000e+00> : vector<16x16xf32>
    %55 = tpu.matmul %50, %52, %cst_23 {dimension_numbers = #tpu.dot_dimension_numbers<[1], [1], [0], [0], [0, 0, 1, 0], [], []>} : vector<16x16xbf16>, vector<16x16xbf16>, vector<16x16xf32> -> vector<16x16xf32>
    %cst_24 = arith.constant 2.500000e-01 : f32
    %56 = vector.broadcast %cst_24 : f32 to vector<16x16xf32>
    %57 = arith.mulf %55, %56 : vector<16x16xf32>
    %58 = arith.addf %57, %0 : vector<16x16xf32>
    %cst_25 = arith.constant dense<0xFF800000> : vector<16xf32>
    %59 = vector.multi_reduction <maximumf>, %58, %cst_25 [1] : vector<16x16xf32> to vector<16xf32>
    %60 = vector.shape_cast %59 : vector<16xf32> to vector<16x1xf32>
    %61 = vector.broadcast %60 : vector<16x1xf32> to vector<16x16xf32>
    %62 = arith.subf %58, %61 : vector<16x16xf32>
    %63 = math.exp %62 : vector<16x16xf32>
    %cst_26 = arith.constant dense<0.000000e+00> : vector<16xf32>
    %64 = vector.multi_reduction <add>, %63, %cst_26 [1] : vector<16x16xf32> to vector<16xf32>
    %65 = vector.shape_cast %64 : vector<16xf32> to vector<16x1xf32>
    %66 = tpu.reciprocal %65 {approx = true} : vector<16x1xf32> -> vector<16x1xf32>
    %67 = vector.broadcast %66 : vector<16x1xf32> to vector<16x16xf32>
    %68 = arith.mulf %63, %67 : vector<16x16xf32>
    %69 = arith.truncf %68 : vector<16x16xf32> to vector<16x16xbf16>
    %cst_27 = arith.constant dense<0.000000e+00> : vector<16x16xf32>
    %70 = tpu.matmul %69, %54, %cst_27 {dimension_numbers = #tpu.dot_dimension_numbers<[1], [0], [0], [1], [0, 0, 1, 1], [], []>} : vector<16x16xbf16>, vector<16x16xbf16>, vector<16x16xf32> -> vector<16x16xf32>
    %71 = arith.truncf %70 : vector<16x16xf32> to vector<16x16xbf16>
    %72 = vector.extract_strided_slice %48 {offsets = [0, 0], sizes = [16, 32], strides = [1, 1]} : vector<32x32xbf16> to vector<16x32xbf16>
    %cst_28 = arith.constant dense<0.000000e+00> : vector<16x32xf32>
    %73 = tpu.matmul %71, %72, %cst_28 {dimension_numbers = #tpu.dot_dimension_numbers<[1], [0], [0], [1], [0, 0, 1, 1], [], []>} : vector<16x16xbf16>, vector<16x32xbf16>, vector<16x32xf32> -> vector<16x32xf32>
    %74 = vector.broadcast %8 : vector<1x32xf32> to vector<16x32xf32>
    %75 = arith.addf %74, %73 : vector<16x32xf32>
    %76 = vector.extract_strided_slice %40 {offsets = [0, 16], sizes = [16, 16], strides = [1, 1]} : vector<16x32xf32> to vector<16x16xf32>
    %77 = arith.truncf %76 : vector<16x16xf32> to vector<16x16xbf16>
    %78 = vector.extract_strided_slice %45 {offsets = [0, 16], sizes = [16, 16], strides = [1, 1]} : vector<16x32xf32> to vector<16x16xf32>
    %79 = arith.truncf %78 : vector<16x16xf32> to vector<16x16xbf16>
    %80 = vector.extract_strided_slice %46 {offsets = [0, 16], sizes = [16, 16], strides = [1, 1]} : vector<16x32xf32> to vector<16x16xf32>
    %81 = arith.truncf %80 : vector<16x16xf32> to vector<16x16xbf16>
    %cst_29 = arith.constant dense<0.000000e+00> : vector<16x16xf32>
    %82 = tpu.matmul %77, %79, %cst_29 {dimension_numbers = #tpu.dot_dimension_numbers<[1], [1], [0], [0], [0, 0, 1, 0], [], []>} : vector<16x16xbf16>, vector<16x16xbf16>, vector<16x16xf32> -> vector<16x16xf32>
    %cst_30 = arith.constant 2.500000e-01 : f32
    %83 = vector.broadcast %cst_30 : f32 to vector<16x16xf32>
    %84 = arith.mulf %82, %83 : vector<16x16xf32>
    %85 = arith.addf %84, %0 : vector<16x16xf32>
    %cst_31 = arith.constant dense<0xFF800000> : vector<16xf32>
    %86 = vector.multi_reduction <maximumf>, %85, %cst_31 [1] : vector<16x16xf32> to vector<16xf32>
    %87 = vector.shape_cast %86 : vector<16xf32> to vector<16x1xf32>
    %88 = vector.broadcast %87 : vector<16x1xf32> to vector<16x16xf32>
    %89 = arith.subf %85, %88 : vector<16x16xf32>
    %90 = math.exp %89 : vector<16x16xf32>
    %cst_32 = arith.constant dense<0.000000e+00> : vector<16xf32>
    %91 = vector.multi_reduction <add>, %90, %cst_32 [1] : vector<16x16xf32> to vector<16xf32>
    %92 = vector.shape_cast %91 : vector<16xf32> to vector<16x1xf32>
    %93 = tpu.reciprocal %92 {approx = true} : vector<16x1xf32> -> vector<16x1xf32>
    %94 = vector.broadcast %93 : vector<16x1xf32> to vector<16x16xf32>
    %95 = arith.mulf %90, %94 : vector<16x16xf32>
    %96 = arith.truncf %95 : vector<16x16xf32> to vector<16x16xbf16>
    %cst_33 = arith.constant dense<0.000000e+00> : vector<16x16xf32>
    %97 = tpu.matmul %96, %81, %cst_33 {dimension_numbers = #tpu.dot_dimension_numbers<[1], [0], [0], [1], [0, 0, 1, 1], [], []>} : vector<16x16xbf16>, vector<16x16xbf16>, vector<16x16xf32> -> vector<16x16xf32>
    %98 = arith.truncf %97 : vector<16x16xf32> to vector<16x16xbf16>
    %99 = vector.extract_strided_slice %48 {offsets = [16, 0], sizes = [16, 32], strides = [1, 1]} : vector<32x32xbf16> to vector<16x32xbf16>
    %cst_34 = arith.constant dense<0.000000e+00> : vector<16x32xf32>
    %100 = tpu.matmul %98, %99, %cst_34 {dimension_numbers = #tpu.dot_dimension_numbers<[1], [0], [0], [1], [0, 0, 1, 1], [], []>} : vector<16x16xbf16>, vector<16x32xbf16>, vector<16x32xf32> -> vector<16x32xf32>
    %101 = arith.addf %75, %100 : vector<16x32xf32>
    %102 = arith.addf %1, %101 : vector<16x32xf32>
    %cst_35 = arith.constant dense<0.000000e+00> : vector<16xf32>
    %103 = vector.multi_reduction <add>, %102, %cst_35 [1] : vector<16x32xf32> to vector<16xf32>
    %104 = vector.shape_cast %103 : vector<16xf32> to vector<16x1xf32>
    %cst_36 = arith.constant 3.200000e+01 : f32
    %105 = vector.broadcast %cst_36 : f32 to vector<16x1xf32>
    %106 = arith.divf %104, %105 : vector<16x1xf32>
    %107 = vector.broadcast %106 : vector<16x1xf32> to vector<16x32xf32>
    %108 = arith.subf %102, %107 : vector<16x32xf32>
    %109 = arith.mulf %108, %108 : vector<16x32xf32>
    %cst_37 = arith.constant dense<0.000000e+00> : vector<16xf32>
    %110 = vector.multi_reduction <add>, %109, %cst_37 [1] : vector<16x32xf32> to vector<16xf32>
    %111 = vector.shape_cast %110 : vector<16xf32> to vector<16x1xf32>
    %cst_38 = arith.constant 3.200000e+01 : f32
    %112 = vector.broadcast %cst_38 : f32 to vector<16x1xf32>
    %113 = arith.divf %111, %112 : vector<16x1xf32>
    %114 = vector.broadcast %106 : vector<16x1xf32> to vector<16x32xf32>
    %115 = arith.subf %102, %114 : vector<16x32xf32>
    %cst_39 = arith.constant 9.99999974E-6 : f32
    %116 = vector.broadcast %cst_39 : f32 to vector<16x1xf32>
    %117 = arith.addf %113, %116 : vector<16x1xf32>
    %118 = math.rsqrt %117 : vector<16x1xf32>
    %119 = vector.broadcast %118 : vector<16x1xf32> to vector<16x32xf32>
    %120 = arith.mulf %115, %119 : vector<16x32xf32>
    %121 = vector.broadcast %6 : vector<1x32xf32> to vector<16x32xf32>
    %122 = arith.mulf %120, %121 : vector<16x32xf32>
    %123 = vector.broadcast %7 : vector<1x32xf32> to vector<16x32xf32>
    %124 = arith.addf %122, %123 : vector<16x32xf32>
    %125 = arith.truncf %124 : vector<16x32xf32> to vector<16x32xbf16>
    %c0_40 = arith.constant 0 : index
    %c0_41 = arith.constant 0 : index
    %c0_42 = arith.constant 0 : index
    %126 = vector.load %arg7[%c0_40, %c0_41, %c0_42] : memref<2x32x128xbf16, #tpu.memory_space<vmem>>, vector<1x32x128xbf16>
    %127 = vector.shape_cast %126 : vector<1x32x128xbf16> to vector<32x128xbf16>
    %cst_43 = arith.constant dense<0.000000e+00> : vector<16x128xf32>
    %128 = tpu.matmul %125, %127, %cst_43 {dimension_numbers = #tpu.dot_dimension_numbers<[1], [0], [0], [1], [0, 0, 1, 1], [], []>} : vector<16x32xbf16>, vector<32x128xbf16>, vector<16x128xf32> -> vector<16x128xf32>
    %c0_44 = arith.constant 0 : index
    %c0_45 = arith.constant 0 : index
    %c0_46 = arith.constant 0 : index
    %129 = vector.load %arg8[%c0_44, %c0_45, %c0_46] : memref<2x1x128xf32, #tpu.memory_space<vmem>>, vector<1x1x128xf32>
    %130 = vector.shape_cast %129 : vector<1x1x128xf32> to vector<1x128xf32>
    %131 = vector.broadcast %130 : vector<1x128xf32> to vector<16x128xf32>
    %132 = arith.addf %128, %131 : vector<16x128xf32>
    %cst_47 = arith.constant 5.000000e-01 : f32
    %133 = vector.broadcast %cst_47 : f32 to vector<16x128xf32>
    %134 = arith.mulf %133, %132 : vector<16x128xf32>
    %cst_48 = arith.constant 4.471500e-02 : f32
    %135 = vector.broadcast %cst_48 : f32 to vector<16x128xf32>
    %136 = arith.mulf %135, %132 : vector<16x128xf32>
    %137 = arith.mulf %136, %132 : vector<16x128xf32>
    %138 = arith.mulf %137, %132 : vector<16x128xf32>
    %139 = arith.addf %132, %138 : vector<16x128xf32>
    %cst_49 = arith.constant 0.797884583 : f32
    %140 = vector.broadcast %cst_49 : f32 to vector<16x128xf32>
    %141 = arith.mulf %140, %139 : vector<16x128xf32>
    %142 = math.tanh %141 : vector<16x128xf32>
    %cst_50 = arith.constant 1.000000e+00 : f32
    %143 = vector.broadcast %cst_50 : f32 to vector<16x128xf32>
    %144 = arith.addf %143, %142 : vector<16x128xf32>
    %145 = arith.mulf %134, %144 : vector<16x128xf32>
    %146 = arith.truncf %145 : vector<16x128xf32> to vector<16x128xbf16>
    %c0_51 = arith.constant 0 : index
    %c0_52 = arith.constant 0 : index
    %c0_53 = arith.constant 0 : index
    %147 = vector.load %arg9[%c0_51, %c0_52, %c0_53] : memref<2x128x32xbf16, #tpu.memory_space<vmem>>, vector<1x128x32xbf16>
    %148 = vector.shape_cast %147 : vector<1x128x32xbf16> to vector<128x32xbf16>
    %cst_54 = arith.constant dense<0.000000e+00> : vector<16x32xf32>
    %149 = tpu.matmul %146, %148, %cst_54 {dimension_numbers = #tpu.dot_dimension_numbers<[1], [0], [0], [1], [0, 0, 1, 1], [], []>} : vector<16x128xbf16>, vector<128x32xbf16>, vector<16x32xf32> -> vector<16x32xf32>
    %150 = vector.broadcast %9 : vector<1x32xf32> to vector<16x32xf32>
    %151 = arith.addf %149, %150 : vector<16x32xf32>
    %152 = arith.addf %102, %151 : vector<16x32xf32>
    %c1 = arith.constant 1 : index
    %c0_55 = arith.constant 0 : index
    %c0_56 = arith.constant 0 : index
    %153 = vector.load %arg6[%c1, %c0_55, %c0_56] : memref<2x6x32xf32, #tpu.memory_space<vmem>>, vector<1x6x32xf32>
    %154 = vector.shape_cast %153 : vector<1x6x32xf32> to vector<6x32xf32>
    %155 = vector.extract_strided_slice %154 {offsets = [0, 0], sizes = [1, 32], strides = [1, 1]} : vector<6x32xf32> to vector<1x32xf32>
    %156 = vector.extract_strided_slice %154 {offsets = [1, 0], sizes = [1, 32], strides = [1, 1]} : vector<6x32xf32> to vector<1x32xf32>
    %157 = vector.extract_strided_slice %154 {offsets = [2, 0], sizes = [1, 32], strides = [1, 1]} : vector<6x32xf32> to vector<1x32xf32>
    %158 = vector.extract_strided_slice %154 {offsets = [3, 0], sizes = [1, 32], strides = [1, 1]} : vector<6x32xf32> to vector<1x32xf32>
    %159 = vector.extract_strided_slice %154 {offsets = [4, 0], sizes = [1, 32], strides = [1, 1]} : vector<6x32xf32> to vector<1x32xf32>
    %160 = vector.extract_strided_slice %154 {offsets = [5, 0], sizes = [1, 32], strides = [1, 1]} : vector<6x32xf32> to vector<1x32xf32>
    %cst_57 = arith.constant dense<0.000000e+00> : vector<16xf32>
    %161 = vector.multi_reduction <add>, %152, %cst_57 [1] : vector<16x32xf32> to vector<16xf32>
    %162 = vector.shape_cast %161 : vector<16xf32> to vector<16x1xf32>
    %cst_58 = arith.constant 3.200000e+01 : f32
    %163 = vector.broadcast %cst_58 : f32 to vector<16x1xf32>
    %164 = arith.divf %162, %163 : vector<16x1xf32>
    %165 = vector.broadcast %164 : vector<16x1xf32> to vector<16x32xf32>
    %166 = arith.subf %152, %165 : vector<16x32xf32>
    %167 = arith.mulf %166, %166 : vector<16x32xf32>
    %cst_59 = arith.constant dense<0.000000e+00> : vector<16xf32>
    %168 = vector.multi_reduction <add>, %167, %cst_59 [1] : vector<16x32xf32> to vector<16xf32>
    %169 = vector.shape_cast %168 : vector<16xf32> to vector<16x1xf32>
    %cst_60 = arith.constant 3.200000e+01 : f32
    %170 = vector.broadcast %cst_60 : f32 to vector<16x1xf32>
    %171 = arith.divf %169, %170 : vector<16x1xf32>
    %172 = vector.broadcast %164 : vector<16x1xf32> to vector<16x32xf32>
    %173 = arith.subf %152, %172 : vector<16x32xf32>
    %cst_61 = arith.constant 9.99999974E-6 : f32
    %174 = vector.broadcast %cst_61 : f32 to vector<16x1xf32>
    %175 = arith.addf %171, %174 : vector<16x1xf32>
    %176 = math.rsqrt %175 : vector<16x1xf32>
    %177 = vector.broadcast %176 : vector<16x1xf32> to vector<16x32xf32>
    %178 = arith.mulf %173, %177 : vector<16x32xf32>
    %179 = vector.broadcast %155 : vector<1x32xf32> to vector<16x32xf32>
    %180 = arith.mulf %178, %179 : vector<16x32xf32>
    %181 = vector.broadcast %156 : vector<1x32xf32> to vector<16x32xf32>
    %182 = arith.addf %180, %181 : vector<16x32xf32>
    %183 = arith.truncf %182 : vector<16x32xf32> to vector<16x32xbf16>
    %c1_62 = arith.constant 1 : index
    %c0_63 = arith.constant 0 : index
    %c0_64 = arith.constant 0 : index
    %184 = vector.load %arg3[%c1_62, %c0_63, %c0_64] : memref<2x32x96xbf16, #tpu.memory_space<vmem>>, vector<1x32x96xbf16>
    %185 = vector.shape_cast %184 : vector<1x32x96xbf16> to vector<32x96xbf16>
    %cst_65 = arith.constant dense<0.000000e+00> : vector<16x96xf32>
    %186 = tpu.matmul %183, %185, %cst_65 {dimension_numbers = #tpu.dot_dimension_numbers<[1], [0], [0], [1], [0, 0, 1, 1], [], []>} : vector<16x32xbf16>, vector<32x96xbf16>, vector<16x96xf32> -> vector<16x96xf32>
    %c1_66 = arith.constant 1 : index
    %c0_67 = arith.constant 0 : index
    %c0_68 = arith.constant 0 : index
    %187 = vector.load %arg4[%c1_66, %c0_67, %c0_68] : memref<2x1x96xf32, #tpu.memory_space<vmem>>, vector<1x1x96xf32>
    %188 = vector.shape_cast %187 : vector<1x1x96xf32> to vector<1x96xf32>
    %189 = vector.broadcast %188 : vector<1x96xf32> to vector<16x96xf32>
    %190 = arith.addf %186, %189 : vector<16x96xf32>
    %191 = vector.extract_strided_slice %190 {offsets = [0, 0], sizes = [16, 32], strides = [1, 1]} : vector<16x96xf32> to vector<16x32xf32>
    %192 = vector.extract_strided_slice %190 {offsets = [0, 32], sizes = [16, 64], strides = [1, 1]} : vector<16x96xf32> to vector<16x64xf32>
    %c1_69 = arith.constant 1 : index
    %c0_70 = arith.constant 0 : index
    %c0_71 = arith.constant 0 : index
    %193 = vector.load %arg13[%c1_69, %c0_70, %c0_71] : memref<2x16x64xf32, #tpu.memory_space<vmem>>, vector<1x16x64xf32>
    %194 = vector.shape_cast %193 : vector<1x16x64xf32> to vector<16x64xf32>
    %195 = vector.shape_cast %192 : vector<16x64xf32> to vector<1x16x64xf32>
    tpu.vector_store %arg13[%c1_69, %c0_70, %c0_71], %195 {strides = array<i32>} : memref<2x16x64xf32, #tpu.memory_space<vmem>>, vector<1x16x64xf32>,
    %196 = vector.extract_strided_slice %192 {offsets = [0, 0], sizes = [16, 32], strides = [1, 1]} : vector<16x64xf32> to vector<16x32xf32>
    %197 = vector.extract_strided_slice %192 {offsets = [0, 32], sizes = [16, 32], strides = [1, 1]} : vector<16x64xf32> to vector<16x32xf32>
    %c1_72 = arith.constant 1 : index
    %c0_73 = arith.constant 0 : index
    %c0_74 = arith.constant 0 : index
    %198 = vector.load %arg5[%c1_72, %c0_73, %c0_74] : memref<2x32x32xbf16, #tpu.memory_space<vmem>>, vector<1x32x32xbf16>
    %199 = vector.shape_cast %198 : vector<1x32x32xbf16> to vector<32x32xbf16>
    %200 = vector.extract_strided_slice %191 {offsets = [0, 0], sizes = [16, 16], strides = [1, 1]} : vector<16x32xf32> to vector<16x16xf32>
    %201 = arith.truncf %200 : vector<16x16xf32> to vector<16x16xbf16>
    %202 = vector.extract_strided_slice %196 {offsets = [0, 0], sizes = [16, 16], strides = [1, 1]} : vector<16x32xf32> to vector<16x16xf32>
    %203 = arith.truncf %202 : vector<16x16xf32> to vector<16x16xbf16>
    %204 = vector.extract_strided_slice %197 {offsets = [0, 0], sizes = [16, 16], strides = [1, 1]} : vector<16x32xf32> to vector<16x16xf32>
    %205 = arith.truncf %204 : vector<16x16xf32> to vector<16x16xbf16>
    %cst_75 = arith.constant dense<0.000000e+00> : vector<16x16xf32>
    %206 = tpu.matmul %201, %203, %cst_75 {dimension_numbers = #tpu.dot_dimension_numbers<[1], [1], [0], [0], [0, 0, 1, 0], [], []>} : vector<16x16xbf16>, vector<16x16xbf16>, vector<16x16xf32> -> vector<16x16xf32>
    %cst_76 = arith.constant 2.500000e-01 : f32
    %207 = vector.broadcast %cst_76 : f32 to vector<16x16xf32>
    %208 = arith.mulf %206, %207 : vector<16x16xf32>
    %209 = arith.addf %208, %0 : vector<16x16xf32>
    %cst_77 = arith.constant dense<0xFF800000> : vector<16xf32>
    %210 = vector.multi_reduction <maximumf>, %209, %cst_77 [1] : vector<16x16xf32> to vector<16xf32>
    %211 = vector.shape_cast %210 : vector<16xf32> to vector<16x1xf32>
    %212 = vector.broadcast %211 : vector<16x1xf32> to vector<16x16xf32>
    %213 = arith.subf %209, %212 : vector<16x16xf32>
    %214 = math.exp %213 : vector<16x16xf32>
    %cst_78 = arith.constant dense<0.000000e+00> : vector<16xf32>
    %215 = vector.multi_reduction <add>, %214, %cst_78 [1] : vector<16x16xf32> to vector<16xf32>
    %216 = vector.shape_cast %215 : vector<16xf32> to vector<16x1xf32>
    %217 = tpu.reciprocal %216 {approx = true} : vector<16x1xf32> -> vector<16x1xf32>
    %218 = vector.broadcast %217 : vector<16x1xf32> to vector<16x16xf32>
    %219 = arith.mulf %214, %218 : vector<16x16xf32>
    %220 = arith.truncf %219 : vector<16x16xf32> to vector<16x16xbf16>
    %cst_79 = arith.constant dense<0.000000e+00> : vector<16x16xf32>
    %221 = tpu.matmul %220, %205, %cst_79 {dimension_numbers = #tpu.dot_dimension_numbers<[1], [0], [0], [1], [0, 0, 1, 1], [], []>} : vector<16x16xbf16>, vector<16x16xbf16>, vector<16x16xf32> -> vector<16x16xf32>
    %222 = arith.truncf %221 : vector<16x16xf32> to vector<16x16xbf16>
    %223 = vector.extract_strided_slice %199 {offsets = [0, 0], sizes = [16, 32], strides = [1, 1]} : vector<32x32xbf16> to vector<16x32xbf16>
    %cst_80 = arith.constant dense<0.000000e+00> : vector<16x32xf32>
    %224 = tpu.matmul %222, %223, %cst_80 {dimension_numbers = #tpu.dot_dimension_numbers<[1], [0], [0], [1], [0, 0, 1, 1], [], []>} : vector<16x16xbf16>, vector<16x32xbf16>, vector<16x32xf32> -> vector<16x32xf32>
    %225 = vector.broadcast %159 : vector<1x32xf32> to vector<16x32xf32>
    %226 = arith.addf %225, %224 : vector<16x32xf32>
    %227 = vector.extract_strided_slice %191 {offsets = [0, 16], sizes = [16, 16], strides = [1, 1]} : vector<16x32xf32> to vector<16x16xf32>
    %228 = arith.truncf %227 : vector<16x16xf32> to vector<16x16xbf16>
    %229 = vector.extract_strided_slice %196 {offsets = [0, 16], sizes = [16, 16], strides = [1, 1]} : vector<16x32xf32> to vector<16x16xf32>
    %230 = arith.truncf %229 : vector<16x16xf32> to vector<16x16xbf16>
    %231 = vector.extract_strided_slice %197 {offsets = [0, 16], sizes = [16, 16], strides = [1, 1]} : vector<16x32xf32> to vector<16x16xf32>
    %232 = arith.truncf %231 : vector<16x16xf32> to vector<16x16xbf16>
    %cst_81 = arith.constant dense<0.000000e+00> : vector<16x16xf32>
    %233 = tpu.matmul %228, %230, %cst_81 {dimension_numbers = #tpu.dot_dimension_numbers<[1], [1], [0], [0], [0, 0, 1, 0], [], []>} : vector<16x16xbf16>, vector<16x16xbf16>, vector<16x16xf32> -> vector<16x16xf32>
    %cst_82 = arith.constant 2.500000e-01 : f32
    %234 = vector.broadcast %cst_82 : f32 to vector<16x16xf32>
    %235 = arith.mulf %233, %234 : vector<16x16xf32>
    %236 = arith.addf %235, %0 : vector<16x16xf32>
    %cst_83 = arith.constant dense<0xFF800000> : vector<16xf32>
    %237 = vector.multi_reduction <maximumf>, %236, %cst_83 [1] : vector<16x16xf32> to vector<16xf32>
    %238 = vector.shape_cast %237 : vector<16xf32> to vector<16x1xf32>
    %239 = vector.broadcast %238 : vector<16x1xf32> to vector<16x16xf32>
    %240 = arith.subf %236, %239 : vector<16x16xf32>
    %241 = math.exp %240 : vector<16x16xf32>
    %cst_84 = arith.constant dense<0.000000e+00> : vector<16xf32>
    %242 = vector.multi_reduction <add>, %241, %cst_84 [1] : vector<16x16xf32> to vector<16xf32>
    %243 = vector.shape_cast %242 : vector<16xf32> to vector<16x1xf32>
    %244 = tpu.reciprocal %243 {approx = true} : vector<16x1xf32> -> vector<16x1xf32>
    %245 = vector.broadcast %244 : vector<16x1xf32> to vector<16x16xf32>
    %246 = arith.mulf %241, %245 : vector<16x16xf32>
    %247 = arith.truncf %246 : vector<16x16xf32> to vector<16x16xbf16>
    %cst_85 = arith.constant dense<0.000000e+00> : vector<16x16xf32>
    %248 = tpu.matmul %247, %232, %cst_85 {dimension_numbers = #tpu.dot_dimension_numbers<[1], [0], [0], [1], [0, 0, 1, 1], [], []>} : vector<16x16xbf16>, vector<16x16xbf16>, vector<16x16xf32> -> vector<16x16xf32>
    %249 = arith.truncf %248 : vector<16x16xf32> to vector<16x16xbf16>
    %250 = vector.extract_strided_slice %199 {offsets = [16, 0], sizes = [16, 32], strides = [1, 1]} : vector<32x32xbf16> to vector<16x32xbf16>
    %cst_86 = arith.constant dense<0.000000e+00> : vector<16x32xf32>
    %251 = tpu.matmul %249, %250, %cst_86 {dimension_numbers = #tpu.dot_dimension_numbers<[1], [0], [0], [1], [0, 0, 1, 1], [], []>} : vector<16x16xbf16>, vector<16x32xbf16>, vector<16x32xf32> -> vector<16x32xf32>
    %252 = arith.addf %226, %251 : vector<16x32xf32>
    %253 = arith.addf %152, %252 : vector<16x32xf32>
    %cst_87 = arith.constant dense<0.000000e+00> : vector<16xf32>
    %254 = vector.multi_reduction <add>, %253, %cst_87 [1] : vector<16x32xf32> to vector<16xf32>
    %255 = vector.shape_cast %254 : vector<16xf32> to vector<16x1xf32>
    %cst_88 = arith.constant 3.200000e+01 : f32
    %256 = vector.broadcast %cst_88 : f32 to vector<16x1xf32>
    %257 = arith.divf %255, %256 : vector<16x1xf32>
    %258 = vector.broadcast %257 : vector<16x1xf32> to vector<16x32xf32>
    %259 = arith.subf %253, %258 : vector<16x32xf32>
    %260 = arith.mulf %259, %259 : vector<16x32xf32>
    %cst_89 = arith.constant dense<0.000000e+00> : vector<16xf32>
    %261 = vector.multi_reduction <add>, %260, %cst_89 [1] : vector<16x32xf32> to vector<16xf32>
    %262 = vector.shape_cast %261 : vector<16xf32> to vector<16x1xf32>
    %cst_90 = arith.constant 3.200000e+01 : f32
    %263 = vector.broadcast %cst_90 : f32 to vector<16x1xf32>
    %264 = arith.divf %262, %263 : vector<16x1xf32>
    %265 = vector.broadcast %257 : vector<16x1xf32> to vector<16x32xf32>
    %266 = arith.subf %253, %265 : vector<16x32xf32>
    %cst_91 = arith.constant 9.99999974E-6 : f32
    %267 = vector.broadcast %cst_91 : f32 to vector<16x1xf32>
    %268 = arith.addf %264, %267 : vector<16x1xf32>
    %269 = math.rsqrt %268 : vector<16x1xf32>
    %270 = vector.broadcast %269 : vector<16x1xf32> to vector<16x32xf32>
    %271 = arith.mulf %266, %270 : vector<16x32xf32>
    %272 = vector.broadcast %157 : vector<1x32xf32> to vector<16x32xf32>
    %273 = arith.mulf %271, %272 : vector<16x32xf32>
    %274 = vector.broadcast %158 : vector<1x32xf32> to vector<16x32xf32>
    %275 = arith.addf %273, %274 : vector<16x32xf32>
    %276 = arith.truncf %275 : vector<16x32xf32> to vector<16x32xbf16>
    %c1_92 = arith.constant 1 : index
    %c0_93 = arith.constant 0 : index
    %c0_94 = arith.constant 0 : index
    %277 = vector.load %arg7[%c1_92, %c0_93, %c0_94] : memref<2x32x128xbf16, #tpu.memory_space<vmem>>, vector<1x32x128xbf16>
    %278 = vector.shape_cast %277 : vector<1x32x128xbf16> to vector<32x128xbf16>
    %cst_95 = arith.constant dense<0.000000e+00> : vector<16x128xf32>
    %279 = tpu.matmul %276, %278, %cst_95 {dimension_numbers = #tpu.dot_dimension_numbers<[1], [0], [0], [1], [0, 0, 1, 1], [], []>} : vector<16x32xbf16>, vector<32x128xbf16>, vector<16x128xf32> -> vector<16x128xf32>
    %c1_96 = arith.constant 1 : index
    %c0_97 = arith.constant 0 : index
    %c0_98 = arith.constant 0 : index
    %280 = vector.load %arg8[%c1_96, %c0_97, %c0_98] : memref<2x1x128xf32, #tpu.memory_space<vmem>>, vector<1x1x128xf32>
    %281 = vector.shape_cast %280 : vector<1x1x128xf32> to vector<1x128xf32>
    %282 = vector.broadcast %281 : vector<1x128xf32> to vector<16x128xf32>
    %283 = arith.addf %279, %282 : vector<16x128xf32>
    %cst_99 = arith.constant 5.000000e-01 : f32
    %284 = vector.broadcast %cst_99 : f32 to vector<16x128xf32>
    %285 = arith.mulf %284, %283 : vector<16x128xf32>
    %cst_100 = arith.constant 4.471500e-02 : f32
    %286 = vector.broadcast %cst_100 : f32 to vector<16x128xf32>
    %287 = arith.mulf %286, %283 : vector<16x128xf32>
    %288 = arith.mulf %287, %283 : vector<16x128xf32>
    %289 = arith.mulf %288, %283 : vector<16x128xf32>
    %290 = arith.addf %283, %289 : vector<16x128xf32>
    %cst_101 = arith.constant 0.797884583 : f32
    %291 = vector.broadcast %cst_101 : f32 to vector<16x128xf32>
    %292 = arith.mulf %291, %290 : vector<16x128xf32>
    %293 = math.tanh %292 : vector<16x128xf32>
    %cst_102 = arith.constant 1.000000e+00 : f32
    %294 = vector.broadcast %cst_102 : f32 to vector<16x128xf32>
    %295 = arith.addf %294, %293 : vector<16x128xf32>
    %296 = arith.mulf %285, %295 : vector<16x128xf32>
    %297 = arith.truncf %296 : vector<16x128xf32> to vector<16x128xbf16>
    %c1_103 = arith.constant 1 : index
    %c0_104 = arith.constant 0 : index
    %c0_105 = arith.constant 0 : index
    %298 = vector.load %arg9[%c1_103, %c0_104, %c0_105] : memref<2x128x32xbf16, #tpu.memory_space<vmem>>, vector<1x128x32xbf16>
    %299 = vector.shape_cast %298 : vector<1x128x32xbf16> to vector<128x32xbf16>
    %cst_106 = arith.constant dense<0.000000e+00> : vector<16x32xf32>
    %300 = tpu.matmul %297, %299, %cst_106 {dimension_numbers = #tpu.dot_dimension_numbers<[1], [0], [0], [1], [0, 0, 1, 1], [], []>} : vector<16x128xbf16>, vector<128x32xbf16>, vector<16x32xf32> -> vector<16x32xf32>
    %301 = vector.broadcast %160 : vector<1x32xf32> to vector<16x32xf32>
    %302 = arith.addf %300, %301 : vector<16x32xf32>
    %303 = arith.addf %253, %302 : vector<16x32xf32>
    %c0_107 = arith.constant 0 : index
    %c0_108 = arith.constant 0 : index
    %304 = vector.load %arg10[%c0_107, %c0_108] : memref<2x32xf32, #tpu.memory_space<vmem>>, vector<2x32xf32>
    %305 = vector.extract_strided_slice %304 {offsets = [0, 0], sizes = [1, 32], strides = [1, 1]} : vector<2x32xf32> to vector<1x32xf32>
    %306 = vector.extract_strided_slice %304 {offsets = [1, 0], sizes = [1, 32], strides = [1, 1]} : vector<2x32xf32> to vector<1x32xf32>
    %cst_109 = arith.constant dense<0.000000e+00> : vector<16xf32>
    %307 = vector.multi_reduction <add>, %303, %cst_109 [1] : vector<16x32xf32> to vector<16xf32>
    %308 = vector.shape_cast %307 : vector<16xf32> to vector<16x1xf32>
    %cst_110 = arith.constant 3.200000e+01 : f32
    %309 = vector.broadcast %cst_110 : f32 to vector<16x1xf32>
    %310 = arith.divf %308, %309 : vector<16x1xf32>
    %311 = vector.broadcast %310 : vector<16x1xf32> to vector<16x32xf32>
    %312 = arith.subf %303, %311 : vector<16x32xf32>
    %313 = arith.mulf %312, %312 : vector<16x32xf32>
    %cst_111 = arith.constant dense<0.000000e+00> : vector<16xf32>
    %314 = vector.multi_reduction <add>, %313, %cst_111 [1] : vector<16x32xf32> to vector<16xf32>
    %315 = vector.shape_cast %314 : vector<16xf32> to vector<16x1xf32>
    %cst_112 = arith.constant 3.200000e+01 : f32
    %316 = vector.broadcast %cst_112 : f32 to vector<16x1xf32>
    %317 = arith.divf %315, %316 : vector<16x1xf32>
    %318 = vector.broadcast %310 : vector<16x1xf32> to vector<16x32xf32>
    %319 = arith.subf %303, %318 : vector<16x32xf32>
    %cst_113 = arith.constant 9.99999974E-6 : f32
    %320 = vector.broadcast %cst_113 : f32 to vector<16x1xf32>
    %321 = arith.addf %317, %320 : vector<16x1xf32>
    %322 = math.rsqrt %321 : vector<16x1xf32>
    %323 = vector.broadcast %322 : vector<16x1xf32> to vector<16x32xf32>
    %324 = arith.mulf %319, %323 : vector<16x32xf32>
    %325 = vector.broadcast %305 : vector<1x32xf32> to vector<16x32xf32>
    %326 = arith.mulf %324, %325 : vector<16x32xf32>
    %327 = vector.broadcast %306 : vector<1x32xf32> to vector<16x32xf32>
    %328 = arith.addf %326, %327 : vector<16x32xf32>
    %329 = arith.truncf %328 : vector<16x32xf32> to vector<16x32xbf16>
    %c0_114 = arith.constant 0 : index
    %c0_115 = arith.constant 0 : index
    %330 = vector.load %arg11[%c0_114, %c0_115] : memref<32x128xbf16, #tpu.memory_space<vmem>>, vector<32x128xbf16>
    %cst_116 = arith.constant dense<0.000000e+00> : vector<16x128xf32>
    %331 = tpu.matmul %329, %330, %cst_116 {dimension_numbers = #tpu.dot_dimension_numbers<[1], [0], [0], [1], [0, 0, 1, 1], [], []>} : vector<16x32xbf16>, vector<32x128xbf16>, vector<16x128xf32> -> vector<16x128xf32>
    %c0_117 = arith.constant 0 : index
    %c0_118 = arith.constant 0 : index
    %332 = vector.load %arg12[%c0_117, %c0_118] : memref<16x128xf32, #tpu.memory_space<vmem>>, vector<16x128xf32>
    tpu.vector_store %arg12[%c0_117, %c0_118], %331 {strides = array<i32>} : memref<16x128xf32, #tpu.memory_space<vmem>>, vector<16x128xf32>,
    %cst_119 = arith.constant dense<0xFF800000> : vector<16xf32>
    %333 = vector.multi_reduction <maximumf>, %331, %cst_119 [1] : vector<16x128xf32> to vector<16xf32>
    %334 = vector.shape_cast %333 : vector<16xf32> to vector<16x1xf32>
    %335 = vector.broadcast %334 : vector<16x1xf32> to vector<16x128xf32>
    %336 = arith.subf %331, %335 : vector<16x128xf32>
    %337 = math.exp %336 : vector<16x128xf32>
    %cst_120 = arith.constant dense<0.000000e+00> : vector<16xf32>
    %338 = vector.multi_reduction <add>, %337, %cst_120 [1] : vector<16x128xf32> to vector<16xf32>
    %339 = vector.shape_cast %338 : vector<16xf32> to vector<16x1xf32>
    %340 = math.log %339 : vector<16x1xf32>
    %341 = arith.addf %334, %340 : vector<16x1xf32>
    %c0_121 = arith.constant 0 : index
    %c0_122 = arith.constant 0 : index
    %342 = vector.load %arg2[%c0_121, %c0_122] : memref<16x1xi32, #tpu.memory_space<vmem>>, vector<16x1xi32>
    %343 = tpu.iota {dimensions = array<i32: 1>} : vector<16x128xi32>
    %344 = vector.broadcast %342 : vector<16x1xi32> to vector<16x128xi32>
    %345 = arith.cmpi eq, %343, %344 : vector<16x128xi32>
    %cst_123 = arith.constant 0.000000e+00 : f32
    %346 = vector.broadcast %cst_123 : f32 to vector<16x128xf32>
    %347 = arith.select %345, %331, %346 : vector<16x128xi1>, vector<16x128xf32>
    %cst_124 = arith.constant dense<0.000000e+00> : vector<16xf32>
    %348 = vector.multi_reduction <add>, %347, %cst_124 [1] : vector<16x128xf32> to vector<16xf32>
    %349 = vector.shape_cast %348 : vector<16xf32> to vector<16x1xf32>
    %350 = arith.subf %341, %349 : vector<16x1xf32>
    %c0_i32 = arith.constant 0 : i32
    %351 = vector.broadcast %c0_i32 : i32 to vector<16x1xi32>
    %352 = arith.cmpi sge, %342, %351 : vector<16x1xi32>
    %353 = arith.extui %352 : vector<16x1xi1> to vector<16x1xi32>
    %354 = arith.sitofp %353 : vector<16x1xi32> to vector<16x1xf32>
    %355 = arith.mulf %350, %354 : vector<16x1xf32>
    %356 = vector.shape_cast %355 : vector<16x1xf32> to vector<1x16x1xf32>
    %cst_125 = arith.constant dense<0.000000e+00> : vector<1xf32>
    %357 = vector.multi_reduction <add>, %356, %cst_125 [1, 2] : vector<1x16x1xf32> to vector<1xf32>
    %358 = vector.shape_cast %357 : vector<1xf32> to vector<1x1x1xf32>
    %359 = vector.extract %358[0, 0, 0] : f32 from vector<1x1x1xf32>
    %360 = vector.shape_cast %354 : vector<16x1xf32> to vector<1x16x1xf32>
    %cst_126 = arith.constant dense<0.000000e+00> : vector<1xf32>
    %361 = vector.multi_reduction <add>, %360, %cst_126 [1, 2] : vector<1x16x1xf32> to vector<1xf32>
    %362 = vector.shape_cast %361 : vector<1xf32> to vector<1x1x1xf32>
    %363 = vector.extract %362[0, 0, 0] : f32 from vector<1x1x1xf32>
    %cst_127 = arith.constant 1.000000e+00 : f32
    %364 = arith.maximumf %363, %cst_127 : f32
    %365 = arith.divf %359, %364 : f32
    %c0_128 = arith.constant 0 : index
    %c0_129 = arith.constant 0 : index
    %366 = memref.load %arg14[%c0_128, %c0_129] : memref<1x1xf32, #tpu.memory_space<smem>>
    memref.store %365, %arg14[%c0_128, %c0_129] : memref<1x1xf32, #tpu.memory_space<smem>>
    return
  }
}

</mosaic_0001>

<bundles_post_ra>
// kernel: tpu_custom_call.1
= control target key start
LH: loop header
LB: loop body
LE: loop exit
PB: predicated region body
PF: predicated region fallthrough
CT: control target
= control target key end

     0   :  { %20 = vsyncpa [#allocation3], 0  ;;  %s2757_s0 = inlined_call_operand.vmem [shape: f32[16,32], index: 0, kind: input, shape index: {}]   ;;  %s2758_s1 = inlined_call_operand.vmem [shape: f32[16,16], index: 1, kind: input, shape index: {}]   ;;  %s2759_s2 = inlined_call_operand.vmem [shape: s32[16,1], index: 2, kind: input, shape index: {}]   ;;  %s2760_s3 = inlined_call_operand.vmem [shape: bf16[2,32,96], index: 3, kind: input, shape index: {}]   ;;  %s2761_s4 = inlined_call_operand.vmem [shape: f32[2,1,96], index: 4, kind: input, shape index: {}]   ;;  %s2762_s5 = inlined_call_operand.vmem [shape: bf16[2,32,32], index: 5, kind: input, shape index: {}]   ;;  %s2763_s6 = inlined_call_operand.vmem [shape: f32[2,6,32], index: 6, kind: input, shape index: {}]   ;;  %s2764_s7 = inlined_call_operand.vmem [shape: bf16[2,32,128], index: 7, kind: input, shape index: {}]   ;;  %s2765_s8 = inlined_call_operand.vmem [shape: f32[2,1,128], index: 8, kind: input, shape index: {}]   ;;  %s2766_s9 = inlined_call_operand.vmem [shape: bf16[2,128,32], index: 9, kind: input, shape index: {}]   ;;  %s2767_s10 = inlined_call_operand.vmem [shape: f32[2,32], index: 10, kind: input, shape index: {}]   ;;  %s2768_s11 = inlined_call_operand.vmem [shape: bf16[32,128], index: 11, kind: input, shape index: {}]   ;;  %s2769_s12 = inlined_call_operand.hbm [shape: f32[16,128], index: 12, kind: output, shape index: {0}]   ;;  %s2770_s13 = inlined_call_operand.hbm [shape: f32[2,16,64], index: 13, kind: output, shape index: {1}]   ;;  %s2771_s14 = inlined_call_operand.hbm [shape: f32[1,1], index: 14, kind: output, shape index: {2}]  }
   0x1   :  { %21 = vsyncpa [#allocation6], 0  ;;  %v2296_v0 = vld [vmem:[%s2757_s0] sm:$0xff]  ;;  %vm53_vm0 = vcmask 261120   ;;  %v2301_v1 = vld [vmem:[%s2757_s0 + $0x8] sm:$0xff] }
   0x2   :  { %v54_v2 = vsel %vm53_vm0, %v2296_v0, 0.0  ;;  %v57_v3 = vsel %vm53_vm0, %v2301_v1, 0.0 }
   0x3   :  { %55 = vadd.xlane.f32.xlu0 %v54_v2 }
   0x7   :  { %58 = vadd.xlane.f32.xlu0 %v57_v3 }
   0x8   :  { %22 = vsyncpa [#allocation4], 0  ;;  %v2044_v14 = vld [vmem:[%s2760_s3] sm:$0xff]   ;;  %v2204_v15 = vmov 0.0   ;;  %v2045_v16 = vld [vmem:[%s2760_s3 + $0x8] sm:$0xff]   ;;  %vm2205_vm1 = vmmov 0   ;;  %v81_v21 = vlaneseq }
   0x9   :  { %1870 = vmatprep.subr.bf16.mxu1 %v2204_v15  ;;  %1884 = vmatprep.subr.bf16.mxu0 %v2204_v15  ;;  %v2334_v26 = vld [vmem:[%s2763_s6] sm:$0x3f]  ;;  %s2206_s24 = smov 96   ;;  %s2207_s25 = smov 80   ;;  %vm180_vm2 = vcmask 130048   ;;  %v2377_v54 = vld [vmem:[%s2758_s1 + $0x8] sm:$0xff] }
   0xa   :  { %1871 = vmatpush3.bf16.msra.mxu1 %v2044_v14  ;;  %1874 = vmatprep.mubr.msk.bf16.mxu1 %vm2205_vm1, %v2204_v15  ;;  %v2326_v24 = vshrl.u32 %v81_v21, 7  ;;  %v1729_v39 = vld [vmem:[%s2761_s4] ss:$0 sm:$0xff]  ;;  %s2208_s26 = smov 112   ;;  %s2210_s0 = smov 48   ;;  %vm169_vm5 = vcmask 523264  }
   0xb   :  { %1872 = vmatprep.subr.bf16.mxu1 %v2204_v15  ;;  %1886 = vmatprep.mubr.msk.bf16.mxu0 %vm2205_vm1, %v2204_v15  ;;  %v2372_v50 = vld [vmem:[%s2758_s1] sm:$0xff]  ;;  %s2209_s1 = smov 64   ;;  %vm1652_vm8 = vcmask 7168  }
   0xc   :  { %v2329_v25 = vsub.s32 0, %v2326_v24  ;;  %v2339_v30 = vsub.s32 1, %v2326_v24 }
   0xe   :  { %1873 = vmatpush3.bf16.msra.mxu1 %v2045_v16  ;;  %v84_v29 = vrot.slane %v2334_v26, %v2329_v25  ;;  %v90_v34 = vrot.slane %v2334_v26, %v2339_v30 }
   0xf   :  { %1878 = vmatprep.subr.bf16.mxu1 %v2204_v15 }
  0x90   :  { %v56_v4 = vpop.xlane.xlu0 %55 }
  0x91   :  { %v61_v5 = vmul.f32 0.03125, %v56_v4 }
  0x93   :  { %v63_v6 = vsub.f32 %v2296_v0, %v61_v5 }
  0x94   :  { %v59_v7 = vpop.xlane.xlu0 %58 }
  0x95   :  { %v62_v8 = vmul.f32 0.03125, %v59_v7  ;;  %v65_v9 = vmul.f32 %v63_v6, %v63_v6 }
  0x97   :  { %v64_v10 = vsub.f32 %v2301_v1, %v62_v8  ;;  %v67_v11 = vsel %vm53_vm0, %v65_v9, 0.0 }
  0x98   :  { %68 = vadd.xlane.f32.xlu1 %v67_v11 }
  0x99   :  { %v66_v12 = vmul.f32 %v64_v10, %v64_v10 }
  0x9b   :  { %v70_v13 = vsel %vm53_vm0, %v66_v12, 0.0 }
  0x9c   :  { %71 = vadd.xlane.f32.xlu1 %v70_v13 }
 0x125   :  { %v69_v17 = vpop.xlane.xlu1 %68 }
 0x126   :  { %v73_v18 = vmul.f32 0.03125, %v69_v17 }
 0x128   :  { %v75_v19 = vadd.f32 1e-05, %v73_v18 }
 0x129   :  { %v72_v20 = vpop.xlane.xlu1 %71 }
 0x12a   :  { %2074 = vrsqrt.f32 %v75_v19  ;;  %v74_v22 = vmul.f32 0.03125, %v72_v20 }
 0x12c   :  { %v76_v23 = vadd.f32 1e-05, %v74_v22  ;;  %v2046_v22 = vld [vmem:[%s2762_s5] sm:$0xff]  }
 0x12e   :  { %2076 = vrsqrt.f32 %v76_v23 }
 0x134   :  { %v2075_v27 = vpop.eup %2074 }
 0x135   :  { %v79_v28 = vmul.f32 %v2075_v27, %v63_v6 }
 0x137   :  { %v85_v33 = vmul.f32 %v84_v29, %v79_v28 }
 0x138   :  { %v2077_v31 = vpop.eup %2076 }
 0x139   :  { %v80_v32 = vmul.f32 %v2077_v31, %v64_v10  ;;  %v91_v36 = vadd.f32 %v90_v34, %v85_v33 }
 0x13b   :  { %v86_v35 = vmul.f32 %v84_v29, %v80_v32 }
 0x13d   :  { %v92_v37 = vadd.f32 %v90_v34, %v86_v35 }
 0x13f   :  { %v93_v38 = vpack.c.bf16 %v92_v37, %v91_v36 }
 0x141   :  { %1875 = vmatmul.mubr.msk.bf16.vlgmr.msra.gmra.mrb[0].mxu1 %vm53_vm0, %v93_v38 }
 0x142   :  { %1880 = vmatprep.mubr.msk.bf16.mxu1 %vm2205_vm1, %v2204_v15 }
 0x214   :  { %v154_v40 = vpop.f32.mrb[0].mxu1 }
 0x215   :  { %v1876_v41 = vpop.f32.mrb[1].mxu1  ;;  %v2349_v43 = vadd.f32 %v1729_v39, %v154_v40 }
 0x216   :  { %v157_v42 = vpop.f32.mrb[2].mxu1 }
 0x217   :  { %v2351_v44 = vadd.f32 %v1729_v39, %v157_v42  ;;  %v1877_v45 = vpop.f32.mrb[3].mxu1 }
 0x219   :  { %v2355_v46 = vpack.c.bf16 %v2351_v44, %v2349_v43 }
 0x21b   :  { %178 = vrot.lane.b32.xlu0 %v2355_v46, %s2206_s24 }
 0x21f   :  { %361 = vrot.lane.b32.xlu0 %v2355_v46, %s2207_s25 }
 0x223   :  { %359 = vrot.lane.b32.xlu0 %v2355_v46, %s2208_s26 }
 0x28d   :  { %v179_v47 = vpop.permute.xlu0 %178 }
 0x28e   :  { %v185_v48 = vsel %vm180_vm2, %v179_v47, 0 }
 0x28f   :  { %1879 = vmatpush3.bf16.xpose.msra.mxu1 %v185_v48 }
 0x290   :  { %1890 = vmatprep.subr.bf16.mxu1 %v2204_v15 }
 0x291   :  { %v362_v17 = vpop.permute.xlu0 %361 }
 0x292   :  { %v367_v19 = vsel %vm180_vm2, %v362_v17, 0 }
 0x295   :  { %v360_v20 = vpop.permute.xlu0 %359 }
 0x296   :  { %1881 = vmatmul.mubr.msk.bf16.vlgmr.msra.gmra.mrb[4].mxu1 %vm180_vm2, %v2355_v46 }
 0x297   :  { %1892 = vmatprep.mubr.msk.bf16.mxu1 %vm2205_vm1, %v2204_v15  ;;  %1891 = vmatpush3.bf16.msra.mxu1 %v2046_v22 }
 0x298   :  { %1902 = vmatprep.subr.bf16.mxu1 %v2204_v15 }
 0x369   :  { %v221_v49 = vpop.f32.mrb[4].mxu1 }
 0x36a   :  { %v228_v51 = vmul.f32 0.25, %v221_v49  ;;  %v1882_v52 = vpop.f32.mrb[5].mxu1 }
 0x36b   :  { %v224_v53 = vpop.f32.mrb[6].mxu1 }
 0x36c   :  { %v229_v55 = vmul.f32 0.25, %v224_v53  ;;  %v1883_v56 = vpop.f32.mrb[7].mxu1  ;;  %v230_v57 = vadd.f32 %v228_v51, %v2372_v50 }
 0x36e   :  { %v232_v58 = vsel %vm180_vm2, %v230_v57, -inf  ;;  %v231_v59 = vadd.f32 %v229_v55, %v2377_v54 }
 0x36f   :  { %233 = vmax.xlane.f32.xlu1 %v232_v58 }
 0x370   :  { %v235_v60 = vsel %vm180_vm2, %v231_v59, -inf }
 0x373   :  { %236 = vmax.xlane.f32.xlu1 %v235_v60 }
 0x3fc   :  { %v234_v61 = vpop.xlane.xlu1 %233 }
 0x3fd   :  { %v238_v62 = vsub.f32 %v230_v57, %v234_v61  ;;  %v2047_v57 = vld [vmem:[%s2762_s5 + $0x8] sm:$0xff]  }
 0x3ff   :  { %v240_v63 = vmul.f32 1.442695, %v238_v62 }
 0x400   :  { %v237_v2 = vpop.xlane.xlu1 %236 }
 0x401   :  { %2078 = vpow2.f32 %v240_v63  ;;  %v239_v3 = vsub.f32 %v231_v59, %v237_v2 }
 0x403   :  { %v242_v4 = vmul.f32 1.442695, %v239_v3 }
 0x405   :  { %2080 = vpow2.f32 %v242_v4 }
 0x40b   :  { %v2079_v5 = vpop.eup %2078 }
 0x40c   :  { %v244_v6 = vsel %vm180_vm2, %v2079_v5, 0.0 }
 0x40d   :  { %245 = vadd.xlane.f32.xlu1 %v244_v6 }
 0x40f   :  { %v2081_v7 = vpop.eup %2080 }
 0x410   :  { %v247_v8 = vsel %vm180_vm2, %v2081_v7, 0.0 }
 0x411   :  { %248 = vadd.xlane.f32.xlu1 %v247_v8 }
 0x422   :  { %255 = vrot.lane.b32.xlu1 %v2355_v46, %s2209_s1 }
 0x49a   :  { %v246_v9 = vpop.xlane.xlu1 %245 }
 0x49b   :  { %2082 = vrcp.f32 %v246_v9 }
 0x49e   :  { %v249_v10 = vpop.xlane.xlu1 %248 }
 0x49f   :  { %2084 = vrcp.f32 %v249_v10 }
 0x4a2   :  { %v256_v11 = vpop.permute.xlu1 %255 }
 0x4a3   :  { %1885 = vmatpush3.bf16.msra.mxu0 %v256_v11 }
 0x4a4   :  { %1896 = vmatprep.subr.bf16.mxu0 %v2204_v15 }
 0x4a5   :  { %v2083_v12 = vpop.eup %2082 }
 0x4a6   :  { %v252_v14 = vmul.f32 %v2083_v12, %v2079_v5  ;;  %v355_v12 = vsub.s32 4, %v2326_v24 }
 0x4a9   :  { %v2085_v13 = vpop.eup %2084 }
 0x4aa   :  { %v253_v16 = vmul.f32 %v2085_v13, %v2081_v7  ;;  %v356_v13 = vrot.slane %v2334_v26, %v355_v12 }
 0x4ac   :  { %v254_v18 = vpack.c.bf16 %v253_v16, %v252_v14 }
 0x4ae   :  { %1887 = vmatmul.mubr.msk.bf16.vlgmr.msra.gmra.mrb[0].mxu0 %vm180_vm2, %v254_v18 }
 0x4af   :  { %1897 = vmatpush3.bf16.xpose.msra.mxu0 %v367_v19  ;;  %1898 = vmatprep.mubr.msk.bf16.mxu0 %vm2205_vm1, %v2204_v15 }
 0x4b0   :  { %1908 = vmatprep.subr.bf16.mxu0 %v2204_v15 }
 0x4b6   :  { %1899 = vmatmul.mubr.msk.bf16.vlgmr.msra.gmra.mrb[4].mxu0 %vm180_vm2, %v360_v20 }
 0x4b7   :  { %1910 = vmatprep.mubr.msk.bf16.mxu0 %vm2205_vm1, %v2204_v15  ;;  %1909 = vmatpush3.bf16.msra.mxu0 %v2047_v57  ;;  %v573_v57 = vsub.s32 3, %v2326_v24 }
 0x4b8   :  { %1922 = vmatprep.subr.bf16.mxu0 %v2204_v15 }
 0x581   :  { %v295_v23 = vpop.f32.mrb[0].mxu0 }
 0x582   :  { %v1888_v27 = vpop.f32.mrb[1].mxu0 }
 0x583   :  { %v298_v28 = vpop.f32.mrb[2].mxu0 }
 0x584   :  { %v302_v29 = vpack.c.bf16 %v298_v28, %v295_v23  ;;  %v1889_v31 = vpop.f32.mrb[3].mxu0 }
 0x586   :  { %1893 = vmatmul.mubr.msk.bf16.vlgmr.msra.gmra.mrb[8].mxu1 %vm180_vm2, %v302_v29 }
 0x587   :  { %1904 = vmatprep.mubr.msk.bf16.mxu1 %vm2205_vm1, %v2204_v15 }
 0x589   :  { %v403_v32 = vpop.f32.mrb[4].mxu0 }
 0x58a   :  { %v410_v33 = vmul.f32 0.25, %v403_v32  ;;  %v1900_v34 = vpop.f32.mrb[5].mxu0 }
 0x58b   :  { %v406_v35 = vpop.f32.mrb[6].mxu0 }
 0x58c   :  { %v411_v36 = vmul.f32 0.25, %v406_v35  ;;  %v1901_v37 = vpop.f32.mrb[7].mxu0  ;;  %v412_v38 = vadd.f32 %v410_v33, %v2372_v50 }
 0x58e   :  { %v414_v39 = vsel %vm180_vm2, %v412_v38, -inf  ;;  %v413_v40 = vadd.f32 %v411_v36, %v2377_v54 }
 0x58f   :  { %415 = vmax.xlane.f32.xlu0 %v414_v39 }
 0x590   :  { %v417_v41 = vsel %vm180_vm2, %v413_v40, -inf }
 0x591   :  { %418 = vmax.xlane.f32.xlu1 %v417_v41  ;;  %v2049_v41 = vld [vmem:[%s2764_s7 + $0x8] sm:$0xff]  }
 0x61c   :  { %v416_v42 = vpop.xlane.xlu0 %415 }
 0x61d   :  { %v420_v45 = vsub.f32 %v412_v38, %v416_v42 }
 0x61e   :  { %v419_v47 = vpop.xlane.xlu1 %418 }
 0x61f   :  { %v422_v48 = vmul.f32 1.442695, %v420_v45  ;;  %v421_v49 = vsub.f32 %v413_v40, %v419_v47  ;;  %v2048_v40 = vld [vmem:[%s2764_s7] sm:$0xff]  }
 0x621   :  { %2086 = vpow2.f32 %v422_v48  ;;  %v424_v51 = vmul.f32 1.442695, %v421_v49 }
 0x623   :  { %2088 = vpow2.f32 %v424_v51 }
 0x62b   :  { %v2087_v52 = vpop.eup %2086 }
 0x62c   :  { %v426_v53 = vsel %vm180_vm2, %v2087_v52, 0.0 }
 0x62d   :  { %v2089_v55 = vpop.eup %2088  ;;  %427 = vadd.xlane.f32.xlu0 %v426_v53 }
 0x62e   :  { %v429_v56 = vsel %vm180_vm2, %v2089_v55, 0.0 }
 0x631   :  { %430 = vadd.xlane.f32.xlu0 %v429_v56 }
 0x647   :  { %437 = vrot.lane.b32.xlu0 %v2355_v46, %s2210_s0 }
 0x659   :  { %v346_v58 = vpop.f32.mrb[8].mxu1 }
 0x65a   :  { %v1894_v59 = vpop.f32.mrb[9].mxu1  ;;  %v357_v14 = vadd.f32 %v356_v13, %v346_v58 }
 0x65b   :  { %v349_v60 = vpop.f32.mrb[10].mxu1 }
 0x65c   :  { %v1895_v61 = vpop.f32.mrb[11].mxu1  ;;  %v358_v17 = vadd.f32 %v356_v13, %v349_v60 }
 0x65d   :  { %v574_v61 = vrot.slane %v2334_v26, %v573_v57 }
 0x6ba   :  { %v428_v62 = vpop.xlane.xlu0 %427 }
 0x6bb   :  { %2090 = vrcp.f32 %v428_v62 }
 0x6be   :  { %v431_v63 = vpop.xlane.xlu0 %430 }
 0x6bf   :  { %2092 = vrcp.f32 %v431_v63 }
 0x6c2   :  { %v438_v2 = vpop.permute.xlu0 %437 }
 0x6c3   :  { %1903 = vmatpush3.bf16.msra.mxu1 %v438_v2 }
 0x6c4   :  { %1914 = vmatprep.subr.bf16.mxu1 %v2204_v15 }
 0x6c5   :  { %v2091_v46 = vpop.eup %2090 }
 0x6c6   :  { %v434_v4 = vmul.f32 %v2091_v46, %v2087_v52  ;;  %v567_v52 = vsub.s32 2, %v2326_v24 }
 0x6c9   :  { %v2093_v3 = vpop.eup %2092 }
 0x6ca   :  { %v435_v5 = vmul.f32 %v2093_v3, %v2089_v55  ;;  %v568_v55 = vrot.slane %v2334_v26, %v567_v52  ;;  %v2050_v3 = vld [vmem:[%s2766_s9] sm:$0xff]  }
 0x6cc   :  { %v436_v6 = vpack.c.bf16 %v435_v5, %v434_v4  ;;  %v2051_v4 = vld [vmem:[%s2766_s9 + $0x8] sm:$0xff]   ;;  %v2052_v5 = vld [vmem:[%s2766_s9 + $0x10] sm:$0xff]  }
 0x6ce   :  { %1905 = vmatmul.mubr.msk.bf16.vlgmr.msra.gmra.mrb[12].mxu1 %vm180_vm2, %v436_v6  ;;  %v2053_v6 = vld [vmem:[%s2766_s9 + $0x18] sm:$0xff]  }
 0x6cf   :  { %1918 = vmatprep.mubr.msk.bf16.mxu1 %vm2205_vm1, %v2204_v15  ;;  %1915 = vmatpush3.bf16.msra.mxu1 %v2048_v40 }
 0x6d0   :  { %1916 = vmatprep.subr.bf16.mxu1 %v2204_v15 }
 0x6d3   :  { %1917 = vmatpush3.bf16.msra.mxu1 %v2049_v41 }
 0x6d4   :  { %1942 = vmatprep.subr.bf16.mxu1 %v2204_v15 }
 0x7a1   :  { %v477_v7 = vpop.f32.mrb[12].mxu1 }
 0x7a2   :  { %v1906_v8 = vpop.f32.mrb[13].mxu1 }
 0x7a3   :  { %v480_v9 = vpop.f32.mrb[14].mxu1  ;;  %v2055_v8 = vld [vmem:[%s2766_s9 + $0x28] sm:$0xff]  }
 0x7a4   :  { %v484_v10 = vpack.c.bf16 %v480_v9, %v477_v7  ;;  %v1907_v11 = vpop.f32.mrb[15].mxu1  ;;  %v2054_v7 = vld [vmem:[%s2766_s9 + $0x20] sm:$0xff]   ;;  %v2056_v9 = vld [vmem:[%s2766_s9 + $0x30] sm:$0xff]  }
 0x7a5   :  { %v1741_v11 = vld [vmem:[%s2765_s8] ss:$0 sm:$0xff] }
 0x7a6   :  { %1911 = vmatmul.mubr.msk.bf16.vlgmr.msra.gmra.mrb[8].mxu0 %vm180_vm2, %v484_v10  ;;  %v2057_v10 = vld [vmem:[%s2766_s9 + $0x38] sm:$0xff]  }
 0x7a7   :  { %1938 = vmatprep.mubr.msk.bf16.mxu0 %vm2205_vm1, %v2204_v15  ;;  %1923 = vmatpush3.bf16.msra.mxu0 %v2050_v3 }
 0x7a8   :  { %1924 = vmatprep.subr.bf16.mxu0 %v2204_v15 }
 0x7ab   :  { %1925 = vmatpush3.bf16.msra.mxu0 %v2051_v4 }
 0x7ac   :  { %1926 = vmatprep.subr.bf16.mxu0 %v2204_v15 }
 0x7af   :  { %1927 = vmatpush3.bf16.msra.mxu0 %v2052_v5 }
 0x7b0   :  { %1928 = vmatprep.subr.bf16.mxu0 %v2204_v15 }
 0x7b3   :  { %1929 = vmatpush3.bf16.msra.mxu0 %v2053_v6 }
 0x7b4   :  { %1930 = vmatprep.subr.bf16.mxu0 %v2204_v15 }
 0x7b7   :  { %1931 = vmatpush3.bf16.msra.mxu0 %v2054_v7  ;;  %v2058_v7 = vld [vmem:[%s2760_s3 + $0x10] sm:$0xff]  }
 0x7b8   :  { %1932 = vmatprep.subr.bf16.mxu0 %v2204_v15 }
 0x7bb   :  { %1933 = vmatpush3.bf16.msra.mxu0 %v2055_v8  ;;  %v2059_v8 = vld [vmem:[%s2760_s3 + $0x18] sm:$0xff]  }
 0x7bc   :  { %1934 = vmatprep.subr.bf16.mxu0 %v2204_v15 }
 0x7bf   :  { %1935 = vmatpush3.bf16.msra.mxu0 %v2056_v9 }
 0x7c0   :  { %1936 = vmatprep.subr.bf16.mxu0 %v2204_v15 }
 0x7c3   :  { %1937 = vmatpush3.bf16.msra.mxu0 %v2057_v10 }
 0x7c4   :  { %1968 = vmatprep.subr.bf16.mxu0 %v2204_v15 }
 0x879   :  { %v528_v16 = vpop.f32.mrb[8].mxu0 }
 0x87a   :  { %v535_v18 = vadd.f32 %v528_v16, %v357_v14  ;;  %v1912_v19 = vpop.f32.mrb[9].mxu0 }
 0x87b   :  { %v531_v20 = vpop.f32.mrb[10].mxu0 }
 0x87c   :  { %v2427_v22 = vadd.f32 %v535_v18, %v2296_v0  ;;  %v536_v23 = vadd.f32 %v531_v20, %v358_v17  ;;  %v1913_v27 = vpop.f32.mrb[11].mxu0 }
 0x87e   :  { %v2430_v28 = vadd.f32 %v536_v23, %v2301_v1  ;;  %v539_v29 = vsel %vm53_vm0, %v2427_v22, 0.0 }
 0x87f   :  { %540 = vadd.xlane.f32.xlu1 %v539_v29 }
 0x880   :  { %v542_v31 = vsel %vm53_vm0, %v2430_v28, 0.0 }
 0x883   :  { %543 = vadd.xlane.f32.xlu1 %v542_v31 }
 0x90c   :  { %v541_v32 = vpop.xlane.xlu1 %540 }
 0x90d   :  { %v545_v33 = vmul.f32 0.03125, %v541_v32 }
 0x90f   :  { %v547_v34 = vsub.f32 %v2427_v22, %v545_v33 }
 0x910   :  { %v544_v35 = vpop.xlane.xlu1 %543 }
 0x911   :  { %v546_v0 = vmul.f32 0.03125, %v544_v35  ;;  %v549_v36 = vmul.f32 %v547_v34, %v547_v34 }
 0x913   :  { %v548_v37 = vsub.f32 %v2430_v28, %v546_v0  ;;  %v551_v1 = vsel %vm53_vm0, %v549_v36, 0.0 }
 0x914   :  { %552 = vadd.xlane.f32.xlu1 %v551_v1 }
 0x915   :  { %v550_v38 = vmul.f32 %v548_v37, %v548_v37 }
 0x917   :  { %v554_v39 = vsel %vm53_vm0, %v550_v38, 0.0 }
 0x918   :  { %555 = vadd.xlane.f32.xlu1 %v554_v39 }
 0x9a1   :  { %v553_v42 = vpop.xlane.xlu1 %552 }
 0x9a2   :  { %v557_v45 = vmul.f32 0.03125, %v553_v42 }
 0x9a4   :  { %v559_v47 = vadd.f32 1e-05, %v557_v45 }
 0x9a5   :  { %v556_v48 = vpop.xlane.xlu1 %555 }
 0x9a6   :  { %2094 = vrsqrt.f32 %v559_v47  ;;  %v558_v49 = vmul.f32 0.03125, %v556_v48  ;;  %v682_v47 = vsub.s32 5, %v2326_v24 }
 0x9a8   :  { %v560_v51 = vadd.f32 1e-05, %v558_v49  ;;  %v683_v48 = vrot.slane %v2334_v26, %v682_v47 }
 0x9aa   :  { %2096 = vrsqrt.f32 %v560_v51 }
 0x9b0   :  { %v2095_v53 = vpop.eup %2094 }
 0x9b1   :  { %v563_v56 = vmul.f32 %v2095_v53, %v547_v34 }
 0x9b3   :  { %v569_v59 = vmul.f32 %v568_v55, %v563_v56 }
 0x9b4   :  { %v2097_v58 = vpop.eup %2096 }
 0x9b5   :  { %v564_v60 = vmul.f32 %v2097_v58, %v548_v37  ;;  %v575_v63 = vadd.f32 %v574_v61, %v569_v59 }
 0x9b7   :  { %v570_v62 = vmul.f32 %v568_v55, %v564_v60 }
 0x9b9   :  { %v576_v2 = vadd.f32 %v574_v61, %v570_v62 }
 0x9bb   :  { %v577_v46 = vpack.c.bf16 %v576_v2, %v575_v63 }
 0x9bd   :  { %1919 = vmatmul.mubr.msk.bf16.vlgmr.msra.gmra.mrb[16].mxu1 %vm53_vm0, %v577_v46 }
 0x9be   :  { %1946 = vmatprep.mubr.msk.bf16.mxu1 %vm2205_vm1, %v2204_v15  ;;  %1943 = vmatpush3.bf16.msra.mxu1 %v2058_v7 }
 0x9bf   :  { %1944 = vmatprep.subr.bf16.mxu1 %v2204_v15 }
 0x9c2   :  { %1945 = vmatpush3.bf16.msra.mxu1 %v2059_v8 }
 0x9c3   :  { %1950 = vmatprep.subr.bf16.mxu1 %v2204_v15 }
 0xa90   :  { %v638_v13 = vpop.f32.mrb[16].mxu1 }
 0xa91   :  { %v639_v14 = vadd.f32 %v1741_v11, %v638_v13  ;;  %v1920_v16 = vpop.f32.mrb[17].mxu1 }
 0xa92   :  { %v641_v17 = vpop.f32.mrb[18].mxu1 }
 0xa93   :  { %v647_v18 = vmul.f32 0.044715, %v639_v14  ;;  %v642_v19 = vadd.f32 %v1741_v11, %v641_v17  ;;  %v1921_v20 = vpop.f32.mrb[19].mxu1  ;;  %v645_v38 = vmul.f32 0.5, %v639_v14  ;;  %v2525_v17 = vld [vmem:[%s2763_s6 + $0x8] sm:$0x3f] }
 0xa95   :  { %v649_v23 = vmul.f32 %v647_v18, %v639_v14  ;;  %v648_v27 = vmul.f32 0.044715, %v642_v19  ;;  %v646_v39 = vmul.f32 0.5, %v642_v19 }
 0xa97   :  { %v651_v29 = vmul.f32 %v649_v23, %v639_v14  ;;  %v650_v31 = vmul.f32 %v648_v27, %v642_v19 }
 0xa99   :  { %v653_v32 = vadd.f32 %v651_v29, %v639_v14  ;;  %v652_v33 = vmul.f32 %v650_v31, %v642_v19  ;;  %v812_v31 = vrot.slane %v2525_v17, %v2339_v30 }
 0xa9b   :  { %v655_v34 = vmul.f32 0.7978846, %v653_v32  ;;  %v654_v35 = vadd.f32 %v652_v33, %v642_v19  ;;  %v806_v19 = vrot.slane %v2525_v17, %v2329_v25 }
 0xa9d   :  { %2098 = vtanh.f32 %v655_v34  ;;  %v656_v0 = vmul.f32 0.7978846, %v654_v35 }
 0xa9f   :  { %2100 = vtanh.f32 %v656_v0  ;;  %v1759_v0 = vld [vmem:[%s2761_s4 + $0x1] ss:$0 sm:$0xff] }
 0xaa7   :  { %v2099_v36 = vpop.eup %2098 }
 0xaa8   :  { %v659_v37 = vadd.f32 1.0, %v2099_v36 }
 0xaa9   :  { %v2101_v1 = vpop.eup %2100 }
 0xaaa   :  { %v660_v40 = vadd.f32 1.0, %v2101_v1  ;;  %v661_v41 = vmul.f32 %v659_v37, %v645_v38 }
 0xaac   :  { %v662_v42 = vmul.f32 %v660_v40, %v646_v39 }
 0xaae   :  { %v663_v45 = vpack.c.bf16 %v662_v42, %v661_v41 }
 0xab0   :  { %1939 = vmatmul.mubr.bf16.vlgmr.msra.gmra.mrb[12].mxu0 %v663_v45 }
 0xab1   :  { %1970 = vmatprep.mubr.msk.bf16.mxu0 %vm2205_vm1, %v2204_v15 }
 0xb83   :  { %v766_v49 = vpop.f32.mrb[12].mxu0 }
 0xb84   :  { %v767_v51 = vadd.f32 %v766_v49, %v683_v48  ;;  %v1940_v53 = vpop.f32.mrb[13].mxu0 }
 0xb85   :  { %v769_v55 = vpop.f32.mrb[14].mxu0 }
 0xb86   :  { %v2501_v56 = vadd.f32 %v767_v51, %v2427_v22  ;;  %v770_v58 = vadd.f32 %v769_v55, %v683_v48  ;;  %v1941_v59 = vpop.f32.mrb[15].mxu0 }
 0xb88   :  { %v2504_v60 = vadd.f32 %v770_v58, %v2430_v28  ;;  %v777_v61 = vsel %vm53_vm0, %v2501_v56, 0.0 }
 0xb89   :  { %778 = vadd.xlane.f32.xlu1 %v777_v61 }
 0xb8a   :  { %v780_v62 = vsel %vm53_vm0, %v2504_v60, 0.0 }
 0xb8d   :  { %781 = vadd.xlane.f32.xlu1 %v780_v62 }
 0xc16   :  { %v779_v26 = vpop.xlane.xlu1 %778 }
 0xc17   :  { %v783_v63 = vmul.f32 0.03125, %v779_v26 }
 0xc19   :  { %v785_v2 = vsub.f32 %v2501_v56, %v783_v63 }
 0xc1a   :  { %v782_v46 = vpop.xlane.xlu1 %781 }
 0xc1b   :  { %v784_v22 = vmul.f32 0.03125, %v782_v46  ;;  %v787_v3 = vmul.f32 %v785_v2, %v785_v2 }
 0xc1d   :  { %v786_v4 = vsub.f32 %v2504_v60, %v784_v22  ;;  %v789_v28 = vsel %vm53_vm0, %v787_v3, 0.0 }
 0xc1e   :  { %790 = vadd.xlane.f32.xlu0 %v789_v28 }
 0xc1f   :  { %v788_v5 = vmul.f32 %v786_v4, %v786_v4 }
 0xc21   :  { %v792_v6 = vsel %vm53_vm0, %v788_v5, 0.0 }
 0xc22   :  { %793 = vadd.xlane.f32.xlu1 %v792_v6 }
 0xcab   :  { %v791_v9 = vpop.xlane.xlu0 %790 }
 0xcac   :  { %v795_v10 = vmul.f32 0.03125, %v791_v9 }
 0xcae   :  { %v797_v11 = vadd.f32 1e-05, %v795_v10 }
 0xcaf   :  { %v794_v13 = vpop.xlane.xlu1 %793 }
 0xcb0   :  { %2102 = vrsqrt.f32 %v797_v11  ;;  %v796_v14 = vmul.f32 0.03125, %v794_v13 }
 0xcb2   :  { %v798_v16 = vadd.f32 1e-05, %v796_v14 }
 0xcb4   :  { %2104 = vrsqrt.f32 %v798_v16 }
 0xcba   :  { %v2103_v18 = vpop.eup %2102 }
 0xcbb   :  { %v801_v20 = vmul.f32 %v2103_v18, %v785_v2 }
 0xcbd   :  { %v807_v27 = vmul.f32 %v806_v19, %v801_v20 }
 0xcbe   :  { %v2105_v23 = vpop.eup %2104 }
 0xcbf   :  { %v802_v29 = vmul.f32 %v2105_v23, %v786_v4  ;;  %v813_v33 = vadd.f32 %v812_v31, %v807_v27 }
 0xcc1   :  { %v808_v32 = vmul.f32 %v806_v19, %v802_v29 }
 0xcc3   :  { %v814_v34 = vadd.f32 %v812_v31, %v808_v32 }
 0xcc5   :  { %v815_v35 = vpack.c.bf16 %v814_v34, %v813_v33 }
 0xcc7   :  { %1947 = vmatmul.mubr.msk.bf16.vlgmr.msra.gmra.mrb[20].mxu1 %vm53_vm0, %v815_v35 }
 0xcc8   :  { %1952 = vmatprep.mubr.msk.bf16.mxu1 %vm2205_vm1, %v2204_v15 }
 0xd9a   :  { %v878_v36 = vpop.f32.mrb[20].mxu1 }
 0xd9b   :  { %v1948_v37 = vpop.f32.mrb[21].mxu1  ;;  %v2537_v38 = vadd.f32 %v1759_v0, %v878_v36 }
 0xd9c   :  { %v881_v1 = vpop.f32.mrb[22].mxu1 }
 0xd9d   :  { %v2539_v39 = vadd.f32 %v1759_v0, %v881_v1  ;;  %v1949_v40 = vpop.f32.mrb[23].mxu1 }
 0xd9f   :  { %v2543_v41 = vpack.c.bf16 %v2539_v39, %v2537_v38 }
 0xda1   :  { %903 = vrot.lane.b32.xlu1 %v2543_v41, %s2206_s24 }
 0xda5   :  { %1085 = vrot.lane.b32.xlu1 %v2543_v41, %s2207_s25 }
 0xda9   :  { %1083 = vrot.lane.b32.xlu1 %v2543_v41, %s2208_s26 }
 0xe13   :  { %v904_v42 = vpop.permute.xlu1 %903 }
 0xe14   :  { %v909_v45 = vsel %vm180_vm2, %v904_v42, 0 }
 0xe15   :  { %1951 = vmatpush3.bf16.xpose.msra.mxu1 %v909_v45 }
 0xe16   :  { %1956 = vmatprep.subr.bf16.mxu1 %v2204_v15 }
 0xe17   :  { %v1086_v48 = vpop.permute.xlu1 %1085 }
 0xe18   :  { %v1091_v49 = vsel %vm180_vm2, %v1086_v48, 0 }
 0xe19   :  { %1969 = vmatpush3.bf16.xpose.msra.mxu0 %v1091_v49 }
 0xe1a   :  { %1980 = vmatprep.subr.bf16.mxu0 %v2204_v15 }
 0xe1b   :  { %v1084_v51 = vpop.permute.xlu1 %1083 }
 0xe1c   :  { %1953 = vmatmul.mubr.msk.bf16.vlgmr.msra.gmra.mrb[24].mxu1 %vm180_vm2, %v2543_v41 }
 0xe1d   :  { %1958 = vmatprep.mubr.msk.bf16.mxu1 %vm2205_vm1, %v2204_v15 }
 0xe20   :  { %1971 = vmatmul.mubr.msk.bf16.vlgmr.msra.gmra.mrb[16].mxu0 %vm180_vm2, %v1084_v51 }
 0xe21   :  { %1982 = vmatprep.mubr.msk.bf16.mxu0 %vm2205_vm1, %v2204_v15 }
 0xeef   :  { %v945_v53 = vpop.f32.mrb[24].mxu1 }
 0xef0   :  { %v952_v55 = vmul.f32 0.25, %v945_v53  ;;  %v1954_v58 = vpop.f32.mrb[25].mxu1 }
 0xef1   :  { %v948_v59 = vpop.f32.mrb[26].mxu1 }
 0xef2   :  { %v953_v61 = vmul.f32 0.25, %v948_v59  ;;  %v1955_v62 = vpop.f32.mrb[27].mxu1  ;;  %v954_v26 = vadd.f32 %v952_v55, %v2372_v50  ;;  %v2060_v55 = vld [vmem:[%s2762_s5 + $0x10] sm:$0xff]  }
 0xef3   :  { %v1127_v63 = vpop.f32.mrb[16].mxu0 }
 0xef4   :  { %v1972_v2 = vpop.f32.mrb[17].mxu0  ;;  %v956_v46 = vsel %vm180_vm2, %v954_v26, -inf  ;;  %v955_v22 = vadd.f32 %v953_v61, %v2377_v54 }
 0xef5   :  { %957 = vmax.xlane.f32.xlu0 %v956_v46  ;;  %v1130_v3 = vpop.f32.mrb[18].mxu0 }
 0xef6   :  { %v1135_v4 = vmul.f32 0.25, %v1130_v3  ;;  %v1973_v28 = vpop.f32.mrb[19].mxu0  ;;  %v959_v5 = vsel %vm180_vm2, %v955_v22, -inf }
 0xef7   :  { %960 = vmax.xlane.f32.xlu1 %v959_v5  ;;  %v2061_v5 = vld [vmem:[%s2762_s5 + $0x18] sm:$0xff]  }
 0xef8   :  { %v1137_v6 = vadd.f32 %v1135_v4, %v2377_v54  ;;  %v1134_v54 = vmul.f32 0.25, %v1127_v63  ;;  %1981 = vmatpush3.bf16.msra.mxu0 %v2061_v5 }
 0xef9   :  { %1994 = vmatprep.subr.bf16.mxu0 %v2204_v15 }
 0xefa   :  { %v1141_v7 = vsel %vm180_vm2, %v1137_v6, -inf  ;;  %v1136_v23 = vadd.f32 %v1134_v54, %v2372_v50 }
 0xefb   :  { %1142 = vmax.xlane.f32.xlu1 %v1141_v7 }
 0xefc   :  { %v1138_v27 = vsel %vm180_vm2, %v1136_v23, -inf }
 0xf82   :  { %v958_v8 = vpop.xlane.xlu0 %957 }
 0xf83   :  { %v962_v9 = vsub.f32 %v954_v26, %v958_v8 }
 0xf84   :  { %v961_v10 = vpop.xlane.xlu1 %960 }
 0xf85   :  { %v964_v11 = vmul.f32 1.442695, %v962_v9  ;;  %v963_v13 = vsub.f32 %v955_v22, %v961_v10 }
 0xf87   :  { %2106 = vpow2.f32 %v964_v11  ;;  %v966_v14 = vmul.f32 1.442695, %v963_v13 }
 0xf88   :  { %v1143_v50 = vpop.xlane.xlu1 %1142 }
 0xf89   :  { %2108 = vpow2.f32 %v966_v14  ;;  %v1145_v37 = vsub.f32 %v1137_v6, %v1143_v50 }
 0xf8b   :  { %v1148_v42 = vmul.f32 1.442695, %v1145_v37 }
 0xf91   :  { %v2107_v16 = vpop.eup %2106 }
 0xf92   :  { %v968_v18 = vsel %vm180_vm2, %v2107_v16, 0.0 }
 0xf93   :  { %v2109_v19 = vpop.eup %2108  ;;  %969 = vadd.xlane.f32.xlu0 %v968_v18  ;;  %v1080_v18 = vrot.slane %v2525_v17, %v355_v12 }
 0xf94   :  { %v971_v20 = vsel %vm180_vm2, %v2109_v19, 0.0 }
 0xf97   :  { %972 = vadd.xlane.f32.xlu0 %v971_v20 }
 0xfad   :  { %979 = vrot.lane.b32.xlu0 %v2543_v41, %s2209_s1 }
 0xfcc   :  { %1139 = vmax.xlane.f32.xlu0 %v1138_v27 }
0x1020   :  { %v970_v29 = vpop.xlane.xlu0 %969 }
0x1021   :  { %2110 = vrcp.f32 %v970_v29 }
0x1024   :  { %v973_v31 = vpop.xlane.xlu0 %972 }
0x1025   :  { %2112 = vrcp.f32 %v973_v31 }
0x1028   :  { %v980_v32 = vpop.permute.xlu0 %979 }
0x1029   :  { %1957 = vmatpush3.bf16.msra.mxu1 %v980_v32 }
0x102a   :  { %1962 = vmatprep.subr.bf16.mxu1 %v2204_v15 }
0x102b   :  { %v2111_v33 = vpop.eup %2110 }
0x102c   :  { %v976_v35 = vmul.f32 %v2111_v33, %v2107_v16 }
0x102f   :  { %v2113_v34 = vpop.eup %2112 }
0x1030   :  { %v977_v0 = vmul.f32 %v2113_v34, %v2109_v19 }
0x1032   :  { %v978_v36 = vpack.c.bf16 %v977_v0, %v976_v35 }
0x1034   :  { %1959 = vmatmul.mubr.msk.bf16.vlgmr.msra.gmra.mrb[28].mxu1 %vm180_vm2, %v978_v36 }
0x1035   :  { %1964 = vmatprep.mubr.msk.bf16.mxu1 %vm2205_vm1, %v2204_v15  ;;  %1963 = vmatpush3.bf16.msra.mxu1 %v2060_v55 }
0x1036   :  { %1974 = vmatprep.subr.bf16.mxu1 %v2204_v15 }
0x1059   :  { %v1140_v1 = vpop.xlane.xlu0 %1139 }
0x105a   :  { %v1144_v40 = vsub.f32 %v1136_v23, %v1140_v1 }
0x105c   :  { %v1146_v45 = vmul.f32 1.442695, %v1144_v40 }
0x105e   :  { %2114 = vpow2.f32 %v1146_v45 }
0x105f   :  { %2116 = vpow2.f32 %v1148_v42 }
0x1068   :  { %v2115_v48 = vpop.eup %2114 }
0x1069   :  { %v1150_v49 = vsel %vm180_vm2, %v2115_v48, 0.0  ;;  %v2117_v51 = vpop.eup %2116 }
0x106a   :  { %1151 = vadd.xlane.f32.xlu1 %v1150_v49  ;;  %v1153_v53 = vsel %vm180_vm2, %v2117_v51, 0.0  ;;  %v2063_v49 = vld [vmem:[%s2764_s7 + $0x18] sm:$0xff]  }
0x106e   :  { %1154 = vadd.xlane.f32.xlu1 %v1153_v53 }
0x107f   :  { %1161 = vrot.lane.b32.xlu1 %v2543_v41, %s2210_s0 }
0x10f7   :  { %v1152_v58 = vpop.xlane.xlu1 %1151 }
0x10fb   :  { %v1155_v59 = vpop.xlane.xlu1 %1154 }
0x10fc   :  { %2118 = vrcp.f32 %v1155_v59 }
0x10fd   :  { %2120 = vrcp.f32 %v1152_v58 }
0x10ff   :  { %v1162_v22 = vpop.permute.xlu1 %1161 }
0x1106   :  { %v2119_v46 = vpop.eup %2118 }
0x1107   :  { %v1019_v61 = vpop.f32.mrb[28].mxu1  ;;  %v2121_v41 = vpop.eup %2120  ;;  %v1159_v3 = vmul.f32 %v2119_v46, %v2117_v51 }
0x1108   :  { %v1960_v62 = vpop.f32.mrb[29].mxu1  ;;  %v1158_v4 = vmul.f32 %v2121_v41, %v2115_v48  ;;  %v2062_v48 = vld [vmem:[%s2764_s7 + $0x10] sm:$0xff]   ;;  %v1298_v41 = vrot.slane %v2525_v17, %v573_v57  ;;  %v2065_v57 = vld [vmem:[%s2766_s9 + $0x48] sm:$0xff]  }
0x1109   :  { %v1022_v26 = vpop.f32.mrb[30].mxu1 }
0x110a   :  { %v1026_v63 = vpack.c.bf16 %v1022_v26, %v1019_v61  ;;  %v1961_v2 = vpop.f32.mrb[31].mxu1  ;;  %v1160_v28 = vpack.c.bf16 %v1159_v3, %v1158_v4  ;;  %v1292_v26 = vrot.slane %v2525_v17, %v567_v52  ;;  %v2064_v52 = vld [vmem:[%s2766_s9 + $0x40] sm:$0xff]  }
0x110c   :  { %1965 = vmatmul.mubr.msk.bf16.vlgmr.msra.gmra.mrb[32].mxu1 %vm180_vm2, %v1026_v63 }
0x110d   :  { %1975 = vmatpush3.bf16.msra.mxu1 %v1162_v22  ;;  %1976 = vmatprep.mubr.msk.bf16.mxu1 %vm2205_vm1, %v2204_v15 }
0x110e   :  { %1986 = vmatprep.subr.bf16.mxu1 %v2204_v15 }
0x1114   :  { %1977 = vmatmul.mubr.msk.bf16.vlgmr.msra.gmra.mrb[36].mxu1 %vm180_vm2, %v1160_v28 }
0x1115   :  { %1990 = vmatprep.mubr.msk.bf16.mxu1 %vm2205_vm1, %v2204_v15  ;;  %1987 = vmatpush3.bf16.msra.mxu1 %v2062_v48 }
0x1116   :  { %1988 = vmatprep.subr.bf16.mxu1 %v2204_v15 }
0x1119   :  { %1989 = vmatpush3.bf16.msra.mxu1 %v2063_v49 }
0x111a   :  { %2014 = vmatprep.subr.bf16.mxu1 %v2204_v15 }
0x11df   :  { %v1070_v6 = vpop.f32.mrb[32].mxu1 }
0x11e0   :  { %v1966_v7 = vpop.f32.mrb[33].mxu1  ;;  %v1081_v19 = vadd.f32 %v1080_v18, %v1070_v6  ;;  %v2066_v6 = vld [vmem:[%s2766_s9 + $0x50] sm:$0xff]  }
0x11e1   :  { %v1073_v8 = vpop.f32.mrb[34].mxu1  ;;  %v2067_v7 = vld [vmem:[%s2766_s9 + $0x58] sm:$0xff]  }
0x11e2   :  { %v1967_v9 = vpop.f32.mrb[35].mxu1  ;;  %v1082_v54 = vadd.f32 %v1080_v18, %v1073_v8  ;;  %v2068_v8 = vld [vmem:[%s2766_s9 + $0x60] sm:$0xff]  }
0x11e3   :  { %v2069_v9 = vld [vmem:[%s2766_s9 + $0x68] sm:$0xff]  }
0x11e7   :  { %v1201_v10 = vpop.f32.mrb[36].mxu1 }
0x11e8   :  { %v1978_v11 = vpop.f32.mrb[37].mxu1 }
0x11e9   :  { %v1204_v13 = vpop.f32.mrb[38].mxu1  ;;  %v2071_v11 = vld [vmem:[%s2766_s9 + $0x78] sm:$0xff]  }
0x11ea   :  { %v1208_v14 = vpack.c.bf16 %v1204_v13, %v1201_v10  ;;  %v1979_v16 = vpop.f32.mrb[39].mxu1  ;;  %v2070_v10 = vld [vmem:[%s2766_s9 + $0x70] sm:$0xff]   ;;  %v1780_v13 = vld [vmem:[%s2765_s8 + $0x1] ss:$0 sm:$0xff] }
0x11ec   :  { %1983 = vmatmul.mubr.msk.bf16.vlgmr.msra.gmra.mrb[20].mxu0 %vm180_vm2, %v1208_v14 }
0x11ed   :  { %2010 = vmatprep.mubr.msk.bf16.mxu0 %vm2205_vm1, %v2204_v15  ;;  %1995 = vmatpush3.bf16.msra.mxu0 %v2064_v52  ;;  %v2073_v52 = vld [vmem:[%s2768_s11 + $0x8] sm:$0xff]  }
0x11ee   :  { %1996 = vmatprep.subr.bf16.mxu0 %v2204_v15 }
0x11f1   :  { %1997 = vmatpush3.bf16.msra.mxu0 %v2065_v57  ;;  %v2687_v57 = vld [vmem:[%s2759_s2 + $0x8] sm:$0xff] }
0x11f2   :  { %1998 = vmatprep.subr.bf16.mxu0 %v2204_v15  ;;  %vm1645_vm7 = vcmp.ge.s32.totalorder %v2687_v57, 0 }
0x11f5   :  { %1999 = vmatpush3.bf16.msra.mxu0 %v2066_v6  ;;  %v2211_v6 = vmov 0  }
0x11f6   :  { %2000 = vmatprep.subr.bf16.mxu0 %v2204_v15  ;;  %2043 = vset.pattern.permute.xlu1 %v2211_v6 }
0x11f7   :  { %2042 = vset.pattern.permute.xlu0 %v2211_v6 }
0x11f9   :  { %2001 = vmatpush3.bf16.msra.mxu0 %v2067_v7 }
0x11fa   :  { %2002 = vmatprep.subr.bf16.mxu0 %v2204_v15 }
0x11fd   :  { %2003 = vmatpush3.bf16.msra.mxu0 %v2068_v8 }
0x11fe   :  { %2004 = vmatprep.subr.bf16.mxu0 %v2204_v15 }
0x1201   :  { %2005 = vmatpush3.bf16.msra.mxu0 %v2069_v9 }
0x1202   :  { %2006 = vmatprep.subr.bf16.mxu0 %v2204_v15 }
0x1205   :  { %2007 = vmatpush3.bf16.msra.mxu0 %v2070_v10 }
0x1206   :  { %2008 = vmatprep.subr.bf16.mxu0 %v2204_v15 }
0x1209   :  { %2009 = vmatpush3.bf16.msra.mxu0 %v2071_v11 }
0x12bf   :  { %v1252_v20 = vpop.f32.mrb[20].mxu0 }
0x12c0   :  { %v1259_v23 = vadd.f32 %v1252_v20, %v1081_v19  ;;  %v1984_v27 = vpop.f32.mrb[21].mxu0 }
0x12c1   :  { %v1255_v29 = vpop.f32.mrb[22].mxu0 }
0x12c2   :  { %v2604_v31 = vadd.f32 %v1259_v23, %v2501_v56  ;;  %v1260_v32 = vadd.f32 %v1255_v29, %v1082_v54  ;;  %v1985_v33 = vpop.f32.mrb[23].mxu0 }
0x12c4   :  { %v2607_v34 = vadd.f32 %v1260_v32, %v2504_v60  ;;  %v1263_v35 = vsel %vm53_vm0, %v2604_v31, 0.0 }
0x12c5   :  { %1264 = vadd.xlane.f32.xlu0 %v1263_v35 }
0x12c6   :  { %v1266_v12 = vsel %vm53_vm0, %v2607_v34, 0.0 }
0x12c7   :  { %1267 = vadd.xlane.f32.xlu1 %v1266_v12 }
0x12d8   :  { %1632 = vperm.xlu1 %2043, %v2687_v57  }
0x1352   :  { %v1265_v0 = vpop.xlane.xlu0 %1264 }
0x1353   :  { %v1269_v36 = vmul.f32 0.03125, %v1265_v0 }
0x1354   :  { %v1268_v50 = vpop.xlane.xlu1 %1267 }
0x1355   :  { %v1271_v37 = vsub.f32 %v2604_v31, %v1269_v36  ;;  %v1270_v56 = vmul.f32 0.03125, %v1268_v50 }
0x1357   :  { %v1272_v1 = vsub.f32 %v2607_v34, %v1270_v56  ;;  %v1273_v40 = vmul.f32 %v1271_v37, %v1271_v37 }
0x1359   :  { %v1275_v60 = vsel %vm53_vm0, %v1273_v40, 0.0  ;;  %v1274_v42 = vmul.f32 %v1272_v1, %v1272_v1 }
0x135a   :  { %1276 = vadd.xlane.f32.xlu0 %v1275_v60 }
0x135b   :  { %v1278_v45 = vsel %vm53_vm0, %v1274_v42, 0.0 }
0x135e   :  { %1279 = vadd.xlane.f32.xlu0 %v1278_v45 }
0x13e7   :  { %v1277_v51 = vpop.xlane.xlu0 %1276 }
0x13e8   :  { %v1281_v53 = vmul.f32 0.03125, %v1277_v51  ;;  %v1410_v51 = vrot.slane %v2525_v17, %v682_v47 }
0x13ea   :  { %v1283_v55 = vadd.f32 1e-05, %v1281_v53 }
0x13eb   :  { %v1280_v58 = vpop.xlane.xlu0 %1279 }
0x13ec   :  { %2122 = vrsqrt.f32 %v1283_v55  ;;  %v1282_v59 = vmul.f32 0.03125, %v1280_v58 }
0x13ee   :  { %v1284_v61 = vadd.f32 1e-05, %v1282_v59 }
0x13f0   :  { %2124 = vrsqrt.f32 %v1284_v61 }
0x13f6   :  { %v2123_v62 = vpop.eup %2122 }
0x13f7   :  { %v1287_v63 = vmul.f32 %v2123_v62, %v1271_v37 }
0x13f9   :  { %v1293_v46 = vmul.f32 %v1292_v26, %v1287_v63 }
0x13fa   :  { %v2125_v2 = vpop.eup %2124 }
0x13fb   :  { %v1288_v22 = vmul.f32 %v2125_v2, %v1272_v1  ;;  %v1299_v4 = vadd.f32 %v1298_v41, %v1293_v46 }
0x13fd   :  { %v1294_v3 = vmul.f32 %v1292_v26, %v1288_v22 }
0x13ff   :  { %v1300_v28 = vadd.f32 %v1298_v41, %v1294_v3 }
0x1401   :  { %v1301_v5 = vpack.c.bf16 %v1300_v28, %v1299_v4 }
0x1403   :  { %1991 = vmatmul.mubr.msk.bf16.vlgmr.msra.gmra.mrb[40].mxu1 %vm53_vm0, %v1301_v5 }
0x1404   :  { %2018 = vmatprep.mubr.msk.bf16.mxu1 %vm2205_vm1, %v2204_v15 }
0x14d6   :  { %v1364_v14 = vpop.f32.mrb[40].mxu1 }
0x14d7   :  { %v1365_v16 = vadd.f32 %v1780_v13, %v1364_v14  ;;  %v1992_v18 = vpop.f32.mrb[41].mxu1  ;;  %v1502_v14 = vld [vmem:[%s2767_s10] sm:$0x3] }
0x14d8   :  { %v1367_v19 = vpop.f32.mrb[42].mxu1  ;;  %v1532_v18 = vrot.slane %v1502_v14, %v2329_v25  ;;  %v1624_v25 = vld [vmem:[%s2759_s2] sm:$0xff]  ;;  %s2212_s2 = smov [#allocation2]  }
0x14d9   :  { %v1373_v20 = vmul.f32 0.044715, %v1365_v16  ;;  %v1368_v54 = vadd.f32 %v1780_v13, %v1367_v19  ;;  %v1993_v23 = vpop.f32.mrb[43].mxu1  ;;  %v1371_v40 = vmul.f32 0.5, %v1365_v16  ;;  %vm1644_vm6 = vcmp.ge.s32.totalorder %v1624_v25, 0  ;;  %s1689_s27 = sshll.u32 %s2212_s2, 4  ;;  %s1690_s27 = int_to_ptr.vmem [resolvable:$true] %s1689_s27 }
0x14da   :  { %s2144_s28 = scalar_lea.vmem %s1690_s27, 256  ;;  %p2149_p1 = scmp.lt.s32.totalorder %s1690_s27, %s1690_s27 }
0x14db   :  { %v1375_v27 = vmul.f32 %v1373_v20, %v1365_v16  ;;  %v1374_v29 = vmul.f32 0.044715, %v1368_v54  ;;  %v1372_v60 = vmul.f32 0.5, %v1368_v54  ;;  %p2145_p0 = scmp.ne.s32.totalorder %s1690_s27, %s2144_s28  ;;  %p2150_p2 = scmp.lt.s32.totalorder %s2144_s28, %s2144_s28 }
0x14dd   :  { %v1377_v32 = vmul.f32 %v1375_v27, %v1365_v16  ;;  %v1376_v33 = vmul.f32 %v1374_v29, %v1368_v54  ;;  %v1538_v27 = vrot.slane %v1502_v14, %v2339_v30  ;;  %p2151_p3 = por %p2150_p2, %p2149_p1 }
0x14df   :  { %v1379_v35 = vadd.f32 %v1377_v32, %v1365_v16  ;;  %v1378_v12 = vmul.f32 %v1376_v33, %v1368_v54  ;;  %p2152_p4 = pnand %p2151_p3, %p2145_p0 }
0x14e1   :  { %v1381_v0 = vmul.f32 0.7978846, %v1379_v35  ;;  %v1380_v36 = vadd.f32 %v1378_v12, %v1368_v54 }
0x14e3   :  { %2126 = vtanh.f32 %v1381_v0  ;;  %v1382_v50 = vmul.f32 0.7978846, %v1380_v36 }
0x14e5   :  { %2128 = vtanh.f32 %v1382_v50 }
0x14ed   :  { %v2127_v37 = vpop.eup %2126 }
0x14ee   :  { %v1385_v56 = vadd.f32 1.0, %v2127_v37 }
0x14ef   :  { %v2129_v1 = vpop.eup %2128 }
0x14f0   :  { %v1386_v42 = vadd.f32 1.0, %v2129_v1  ;;  %v1387_v45 = vmul.f32 %v1385_v56, %v1371_v40 }
0x14f2   :  { %v1388_v48 = vmul.f32 %v1386_v42, %v1372_v60 }
0x14f4   :  { %v1389_v49 = vpack.c.bf16 %v1388_v48, %v1387_v45  ;;  %v1627_v45 = vand.u32 127, %v81_v21 }
0x14f6   :  { %2011 = vmatmul.mubr.bf16.vlgmr.msra.gmra.mrb[24].mxu0 %v1389_v49  ;;  %v1633_v49 = vpop.permute.xlu1 %1632 }
0x14f7   :  { %vm1635_vm4 = vcmp.eq.s32.totalorder %v1627_v45, %v1633_v49 }
0x15c9   :  { %v1493_v53 = vpop.f32.mrb[24].mxu0 }
0x15ca   :  { %v1494_v55 = vadd.f32 %v1493_v53, %v1410_v51  ;;  %v2012_v58 = vpop.f32.mrb[25].mxu0 }
0x15cb   :  { %v1496_v59 = vpop.f32.mrb[26].mxu0 }
0x15cc   :  { %v1497_v61 = vadd.f32 %v1496_v59, %v1410_v51  ;;  %v2013_v62 = vpop.f32.mrb[27].mxu0  ;;  %v1500_v26 = vadd.f32 %v1494_v55, %v2604_v31 }
0x15ce   :  { %v1503_v63 = vsel %vm53_vm0, %v1500_v26, 0.0  ;;  %v1501_v2 = vadd.f32 %v1497_v61, %v2607_v34  ;;  %v2072_v34 = vld [vmem:[%s2768_s11] sm:$0xff]  }
0x15cf   :  { %1504 = vadd.xlane.f32.xlu0 %v1503_v63  ;;  %2015 = vmatpush3.bf16.msra.mxu1 %v2072_v34 }
0x15d0   :  { %v1506_v46 = vsel %vm53_vm0, %v1501_v2, 0.0  ;;  %2016 = vmatprep.subr.bf16.mxu1 %v2204_v15 }
0x15d3   :  { %1507 = vadd.xlane.f32.xlu0 %v1506_v46  ;;  %2017 = vmatpush3.bf16.msra.mxu1 %v2073_v52 }
0x165c   :  { %v1505_v22 = vpop.xlane.xlu0 %1504 }
0x165d   :  { %v1509_v24 = vmul.f32 0.03125, %v1505_v22 }
0x165f   :  { %v1511_v41 = vsub.f32 %v1500_v26, %v1509_v24 }
0x1660   :  { %v1508_v47 = vpop.xlane.xlu0 %1507 }
0x1661   :  { %v1510_v17 = vmul.f32 0.03125, %v1508_v47  ;;  %v1513_v3 = vmul.f32 %v1511_v41, %v1511_v41 }
0x1663   :  { %v1512_v4 = vsub.f32 %v1501_v2, %v1510_v17  ;;  %v1515_v28 = vsel %vm53_vm0, %v1513_v3, 0.0 }
0x1664   :  { %1516 = vadd.xlane.f32.xlu0 %v1515_v28 }
0x1665   :  { %v1514_v5 = vmul.f32 %v1512_v4, %v1512_v4 }
0x1667   :  { %v1518_v31 = vsel %vm53_vm0, %v1514_v5, 0.0 }
0x1668   :  { %1519 = vadd.xlane.f32.xlu0 %v1518_v31 }
0x16f1   :  { %v1517_v7 = vpop.xlane.xlu0 %1516 }
0x16f2   :  { %v1521_v8 = vmul.f32 0.03125, %v1517_v7 }
0x16f4   :  { %v1523_v9 = vadd.f32 1e-05, %v1521_v8 }
0x16f5   :  { %v1520_v10 = vpop.xlane.xlu0 %1519 }
0x16f6   :  { %2130 = vrsqrt.f32 %v1523_v9  ;;  %v1522_v11 = vmul.f32 0.03125, %v1520_v10 }
0x16f8   :  { %v1524_v13 = vadd.f32 1e-05, %v1522_v11 }
0x16fa   :  { %2132 = vrsqrt.f32 %v1524_v13 }
0x1700   :  { %v2131_v16 = vpop.eup %2130 }
0x1701   :  { %v1527_v19 = vmul.f32 %v2131_v16, %v1511_v41  ;;  %v1812_v41 = vsel %vm1645_vm7, 1.0, %v2204_v15 }
0x1702   :  { %v1666_v34 = vsel %vm1652_vm8, %v1812_v41, 0.0 }
0x1703   :  { %v1533_v54 = vmul.f32 %v1532_v18, %v1527_v19 }
0x1704   :  { %v2133_v20 = vpop.eup %2132 }
0x1705   :  { %v1528_v23 = vmul.f32 %v2133_v20, %v1512_v4  ;;  %v1539_v32 = vadd.f32 %v1538_v27, %v1533_v54 }
0x1707   :  { %v1534_v29 = vmul.f32 %v1532_v18, %v1528_v23 }
0x1709   :  { %v1540_v33 = vadd.f32 %v1538_v27, %v1534_v29 }
0x170b   :  { %v1541_v35 = vpack.c.bf16 %v1540_v33, %v1539_v32 }
0x170d   :  { %2019 = vmatmul.mubr.msk.bf16.vlgmr.msra.gmra.mrb[44].mxu1 %vm53_vm0, %v1541_v35 }
0x17e0   :  { %v1595_v12 = vpop.f32.mrb[44].mxu1 }
0x17e1   :  { %1602 = vst [vmem:[#allocation2] sm:$0xff] %v1595_v12  ;;  %1604 = vmax.xlane.f32.xlu0 %v1595_v12  ;;  %v2020_v0 = vpop.f32.mrb[45].mxu1 }
0x17e2   :  { %v1598_v36 = vpop.f32.mrb[46].mxu1 }
0x17e3   :  { %1603 = vst [vmem:[#allocation2 + $0x8] sm:$0xff] %v1598_v36  ;;  %v2021_v50 = vpop.f32.mrb[47].mxu1  ;;  %v1637_v55 = vsel %vm1635_vm4, %v1598_v36, 0.0 }
0x17e5   :  { %1606 = vmax.xlane.f32.xlu0 %v1598_v36 }
0x17fb   :  { %1629 = vperm.xlu0 %2042, %v1624_v25  }
0x186e   :  { %v1605_v30 = vpop.xlane.xlu0 %1604 }
0x186f   :  { %v1608_v37 = vsub.f32 %v1595_v12, %v1605_v30 }
0x1871   :  { %v1610_v56 = vmul.f32 1.442695, %v1608_v37 }
0x1872   :  { %v1607_v1 = vpop.xlane.xlu0 %1606 }
0x1873   :  { %2134 = vpow2.f32 %v1610_v56  ;;  %v1609_v40 = vsub.f32 %v1598_v36, %v1607_v1 }
0x1875   :  { %v1612_v60 = vmul.f32 1.442695, %v1609_v40 }
0x1877   :  { %2136 = vpow2.f32 %v1612_v60 }
0x187a   :  { %v1630_v42 = vpop.permute.xlu0 %1629 }
0x187b   :  { %vm1634_vm3 = vcmp.eq.s32.totalorder %v1627_v45, %v1630_v42 }
0x187c   :  { %v1636_v53 = vsel %vm1634_vm3, %v1595_v12, 0.0 }
0x187d   :  { %v2135_v48 = vpop.eup %2134 }
0x187e   :  { %1614 = vadd.xlane.f32.xlu1 %v2135_v48 }
0x1881   :  { %v2137_v51 = vpop.eup %2136 }
0x1882   :  { %1616 = vadd.xlane.f32.xlu0 %v2137_v51  ;;  %1638 = vadd.xlane.f32.xlu1 %v1636_v53 }
0x1886   :  { %1640 = vadd.xlane.f32.xlu1 %v1637_v55 }
0x1898   :  { %165 = vrot.lane.b32.xlu0 %v2351_v44, %s2206_s24  ;;  %v1811_v44 = vsel %vm1644_vm6, 1.0, %v2204_v15 }
0x1899   :  { %v1665_v31 = vsel %vm1652_vm8, %v1811_v44, 0.0 }
0x189a   :  { %v1667_v6 = vadd.f32 %v1666_v34, %v1665_v31 }
0x190b   :  { %v1615_v58 = vpop.xlane.xlu1 %1614 }
0x190c   :  { %2138 = vlog2.f32 %v1615_v58 }
0x190f   :  { %v1617_v59 = vpop.xlane.xlu0 %1616  ;;  %v1639_v26 = vpop.xlane.xlu1 %1638 }
0x1910   :  { %2140 = vlog2.f32 %v1617_v59 }
0x1913   :  { %v166_v21 = vpop.permute.xlu0 %165  ;;  %v1641_v47 = vpop.xlane.xlu1 %1640 }
0x1914   :  { %171 = vst.msk [vmem:[#allocation5 + $0x8] sm:$0xff] %vm169_vm5, %v166_v21 }
0x1916   :  { %v2139_v61 = vpop.eup %2138 }
0x1917   :  { %v1619_v62 = vmul.f32 0.6931472, %v2139_v61 }
0x1919   :  { %v1622_v63 = vadd.f32 %v1619_v62, %v1605_v30 }
0x191a   :  { %v2141_v2 = vpop.eup %2140 }
0x191b   :  { %v1642_v46 = vsub.f32 %v1622_v63, %v1639_v26  ;;  %v1621_v22 = vmul.f32 0.6931472, %v2141_v2 }
0x191d   :  { %v1623_v24 = vadd.f32 %v1621_v22, %v1607_v1  ;;  %v1650_v17 = vmul.f32 %v1811_v44, %v1642_v46 }
0x191f   :  { %v1643_v3 = vsub.f32 %v1623_v24, %v1641_v47  ;;  %v1653_v28 = vsel %vm1652_vm8, %v1650_v17, 0.0 }
0x1921   :  { %v1651_v4 = vmul.f32 %v1812_v41, %v1643_v3 }
0x1923   :  { %v1654_v5 = vsel %vm1652_vm8, %v1651_v4, 0.0 }
0x1924   :  { %v1655_v52 = vadd.f32 %v1654_v5, %v1653_v28 }
0x1926   :  { %1656 = vadd.xlane.f32.xlu1 %v1655_v52 }
0x192a   :  { %1668 = vadd.xlane.f32.xlu1 %v1667_v6 }
0x193b   :  { %163 = vrot.lane.b32.xlu1 %v2349_v43, %s2206_s24 }
0x193f   :  { %887 = vrot.lane.b32.xlu1 %v2537_v38, %s2206_s24 }
0x1943   :  { %889 = vrot.lane.b32.xlu1 %v2539_v39, %s2206_s24 }
0x19b3   :  { %v1657_v15 = vpop.xlane.xlu1 %1656 }
0x19b4   :  { %v1658_v57 = vrot.slane %v1657_v15, 4 }
0x19b6   :  { %v1659_v7 = vadd.f32 %v1658_v57, %v1657_v15 }
0x19b7   :  { %v1669_v8 = vpop.xlane.xlu1 %1668 }
0x19b8   :  { %v1660_v9 = vrot.slane %v1659_v7, 2  ;;  %v1670_v10 = vrot.slane %v1669_v8, 4 }
0x19b9   :  { %2155 = shalt.err (!%p2152_p4)
}
0x19ba   :  { %s2156_s24 = scalar_lea.hbm %s2769_s12, 256 }
0x19bb   :  { %p2157_p5 = scmp.ne.s32.totalorder %s2769_s12, %s2156_s24  ;;  %p2160_p6 = scmp.lt.u32.totalorder %s2156_s24, %s2769_s12 }
0x19bd   :  { %p2162_p7 = pnand %p2160_p6, %p2157_p5 }
0x19bf   :  { %2165 = shalt.err (!%p2162_p7)
}
0x19c0   :  { %s2213_s19 = smov 128   ;;  %s2214_s20 = smov 8   ;;  %v1671_v43 = vadd.f32 %v1670_v10, %v1669_v8  ;;  %v1661_v38 = vadd.f32 %v1660_v9, %v1659_v7  ;;  %v164_v39 = vpop.permute.xlu1 %163 }
0x19c1   :  { %1695 = dma.vmem_to_hbm [thread:$0]  %s1690_s27, 256, %s2769_s12, [#allocation3], %s2213_s19, %s2213_s19, %s2214_s20   ;;  %170 = vst.msk [vmem:[#allocation5] sm:$0xff] %vm169_vm5, %v164_v39 }
0x19c2   :  { %v1672_v11 = vrot.slane %v1671_v43, 2  ;;  %v1662_v13 = vrot.slane %v1661_v38, 1  ;;  %s2215_s4 = smov [#allocation5]  }
0x19c3   :  { %s1701_s25 = sshll.u32 %s2215_s4, 4  ;;  %s1702_s25 = int_to_ptr.vmem [resolvable:$true] %s1701_s25 }
0x19c4   :  { %v1663_v14 = vadd.f32 %v1662_v13, %v1661_v38  ;;  %v1673_v16 = vadd.f32 %v1672_v11, %v1671_v43  ;;  %v888_v18 = vpop.permute.xlu1 %887  ;;  %s2166_s12 = scalar_lea.vmem %s1702_s25, 512  ;;  %p2171_p9 = scmp.lt.s32.totalorder %s1702_s25, %s1702_s25 }
0x19c5   :  { %894 = vst.msk [vmem:[#allocation5 + $0x10] sm:$0xff] %vm169_vm5, %v888_v18  ;;  %p2167_p8 = scmp.ne.s32.totalorder %s1702_s25, %s2166_s12  ;;  %p2172_p10 = scmp.lt.s32.totalorder %s2166_s12, %s2166_s12 }
0x19c6   :  { %2022 = vpush %v1663_v14  ;;  %v1674_v19 = vrot.slane %v1673_v16, 1 }
0x19c7   :  { %p2173_p11 = por %p2172_p10, %p2171_p9 }
0x19c8   :  { %v1675_v20 = vadd.f32 %v1674_v19, %v1673_v16  ;;  %v890_v54 = vpop.permute.xlu1 %889 }
0x19c9   :  { %895 = vst.msk [vmem:[#allocation5 + $0x18] sm:$0xff] %vm169_vm5, %v890_v54  ;;  %p2174_p12 = pnand %p2173_p11, %p2167_p8 }
0x19ca   :  { %2024 = vpush %v1675_v20 }
0x19cb   :  { %2177 = shalt.err (!%p2174_p12)
}
0x19cc   :  { %s2178_s8 = scalar_lea.hbm %s2770_s13, 512 }
0x19cd   :  { %p2179_p13 = scmp.ne.s32.totalorder %s2770_s13, %s2178_s8  ;;  %p2182_p0 = scmp.lt.u32.totalorder %s2178_s8, %s2770_s13 }
0x19cf   :  { %p2184_p1 = pnand %p2182_p0, %p2179_p13 }
0x19d1   :  { %2187 = shalt.err (!%p2184_p1)
}
0x19d2   :  { %1707 = dma.vmem_to_hbm [thread:$0]  %s1702_s25, 512, %s2770_s13, [#allocation6], %s2213_s19, %s2213_s19, %s2214_s20  }
0x19d3   :  { %s2216_s23 = smov 1.0   ;;  %s2188_s24 = scalar_lea.hbm %s2771_s14, 16 }
0x19d4   :  { %p2189_p2 = scmp.ne.s32.totalorder %s2771_s14, %s2188_s24  ;;  %p2192_p3 = scmp.lt.u32.totalorder %s2188_s24, %s2771_s14 }
0x19d6   :  { %p2194_p4 = pnand %p2192_p3, %p2189_p2 }
0x19f7   :  { %s2023_s7 = spop %2022 }
0x19fb   :  { %s2025_s10 = spop %2024 }
0x19fc   :  { %s1677_s2 = smax.f32 %s2216_s23, %s2025_s10 }
0x19fd   :  { %v1678_v23 = vstv %s1677_s2 }
0x19fe   :  { %2142 = vrcp.f32 %v1678_v23 }
0x1a08   :  { %v2143_v27 = vpop.eup %2142 }
0x1a09   :  { %2026 = vpush %v2143_v27 }
0x1a3a   :  { %s2027_s27 = spop %2026 }
0x1a3b   :  { %s1681_s28 = smul.f32 %s2027_s27, %s2023_s7 }
0x1a3d   :  { %1683 = sst [smem:[#allocation7]] %s1681_s28 }
0x1a3e   :  { %2197 = shalt.err (!%p2194_p4)
}
0x1a3f   :  { %s2217_s18 = smov [#allocation7]  }
0x1a40   :  { %1715 = dma.smem_to_hbm %s2217_s18, 16, %s2771_s14, [#allocation4]  }
0x1a41   :  { %2198 = dma.done.wait [#allocation3], 256  }
0x1a42   :  { %2199 = vsyncadd [#allocation3], 4294967040 }
0x1a43   :  { %2200 = dma.done.wait [#allocation6], 512  }
0x1a44   :  { %2201 = vsyncadd [#allocation6], 4294966784 }
0x1a45   :  { %2202 = dma.done.wait [#allocation4], 16  }
0x1a46   :  { %2203 = vsyncadd [#allocation4], 4294967280 }
0x1a47   :  { %1725 = sfence }
0x1a48   :  { %1726 = vsyncpa [#allocation3], 1 }
0x1a49   :  { %1727 = vsyncpa [#allocation6], 1 }
0x1a4a   :  { %1728 = vsyncpa [#allocation4], 1 }

</bundles_post_ra>
